<compile_context>
chip_gen: v7x
topology: tpu7x:2x2x1
jax: 0.10.0
libtpu: 0.0.40
codegen_flags: <defaults>
</compile_context>

<pallas_src>
import functools

import jax
import jax.numpy as jnp
from jax import lax
from jax.experimental import pallas as pl
from jax.experimental.pallas import tpu as pltpu


def _head_grouping(num_heads, head_dim):
    """Largest number of heads per group s.t. group width <= 128 lanes and it
    divides num_heads. Returns (heads_per_group, num_groups)."""
    for cand in range(num_heads, 0, -1):
        if num_heads % cand == 0 and cand * head_dim <= 128:
            return cand, num_heads // cand
    return 1, num_heads


# ----------------------------------------------------------------------------
# Kernel: one grid step = (batch block b, layer l).
# ----------------------------------------------------------------------------
def fused_encoder_kernel(
    bias_ref,                    # (S, S)      bf16  additive attention bias
    x_ref,                       # (Bb, S, D)  f32   input hidden states
    ln1g_ref, ln1b_ref,          # (1, 1, D)   f32
    wqkv_ref, bqkv_ref,          # (1, D, 3D)  bf16 / (1, 1, 3D) f32
    wo_ref, bo_ref,              # (1, D, D)   bf16 / (1, 1, D)  f32
    ln2g_ref, ln2b_ref,          # (1, 1, D)   f32
    w1_ref, b1_ref,              # (1, D, I)   bf16 / (1, 1, I)  f32
    w2_ref, b2_ref,              # (1, I, D)   bf16 / (1, 1, D)  f32
    out_ref,                     # (Bb, S, D)  f32   (also the layer carry)
    qkv_sc,                      # VMEM (3*NG, Bb, S, GW) bf16  q/k/v, group-major
    heads_sc,                    # VMEM (NG,   Bb, S, GW) bf16  head outputs
    *, head_dim, heads_per_group, num_groups, scale, eps,
):
    layer = pl.program_id(1)
    Bb, S, D = out_ref.shape
    M = Bb * S
    gw = heads_per_group * head_dim
    ng = num_groups

    # First layer of this batch block: seed the resident output block with x.
    @pl.when(layer == 0)
    def _():
        out_ref[...] = x_ref[...]

    x = out_ref[...].reshape(M, D)                    # (M, D) f32 carry
    inv_d = jnp.float32(1.0 / D)
    scale_f = jnp.float32(scale)

    def layer_norm(v, g, b):
        # Single-pass: sum(x) and sum(x*x) are independent reductions.
        s1 = jnp.sum(v, axis=-1, keepdims=True)
        s2 = jnp.sum(v * v, axis=-1, keepdims=True)
        mu = s1 * inv_d
        var = s2 * inv_d - mu * mu
        return (v - mu) * lax.rsqrt(var + eps) * g + b

    # ---- LayerNorm 1 + fused QKV projection (bf16 MXU, f32 accumulate) ------
    h1 = layer_norm(x, ln1g_ref[0], ln1b_ref[0])
    qkv = jnp.dot(h1.astype(jnp.bfloat16), wqkv_ref[0],
                  preferred_element_type=jnp.float32) + bqkv_ref[0]   # (M, 3D)

    # Cast q/k/v to bf16 once (scale folded into q here), store head-group-major
    # so the attention loop only uses leading-axis dynamic indexing.
    for g in range(ng):
        lo = g * gw
        qkv_sc[g] = (qkv[:, lo:lo + gw] * scale_f) \
            .astype(jnp.bfloat16).reshape(Bb, S, gw)
        qkv_sc[ng + g] = qkv[:, D + lo:D + lo + gw] \
            .astype(jnp.bfloat16).reshape(Bb, S, gw)
        qkv_sc[2 * ng + g] = qkv[:, 2 * D + lo:2 * D + lo + gw] \
            .astype(jnp.bfloat16).reshape(Bb, S, gw)

    bias = bias_ref[...].astype(jnp.float32)          # (S, S), hoisted
    dn_qk = (((2,), (2,)), ((0,), (0,)))              # (Bb,S,h)x(Bb,S,h)->(Bb,S,S)
    dn_pv = (((2,), (1,)), ((0,), (0,)))              # (Bb,S,S)x(Bb,S,h)->(Bb,S,h)

    def attn_group(g):
        qg = qkv_sc[g]                                # (Bb, S, gw) bf16
        kg = qkv_sc[ng + g]
        vg = qkv_sc[2 * ng + g]
        parts = []
        for j in range(heads_per_group):              # small static unroll (<= ~2)
            a, b = j * head_dim, (j + 1) * head_dim
            qh, kh, vh = qg[:, :, a:b], kg[:, :, a:b], vg[:, :, a:b]
            s = lax.dot_general(qh, kh, dn_qk,
                                preferred_element_type=jnp.float32)   # (Bb,S,S)
            s = s + bias
            s = s - jnp.max(s, axis=-1, keepdims=True)
            p = jnp.exp(s)
            p = p * pl.reciprocal(jnp.sum(p, axis=-1, keepdims=True), approx=True)
            oh = lax.dot_general(p.astype(jnp.bfloat16), vh, dn_pv,
                                 preferred_element_type=jnp.float32)  # (Bb,S,hd)
            parts.append(oh.astype(jnp.bfloat16))
        og = parts[0] if heads_per_group == 1 else jnp.concatenate(parts, axis=-1)
        heads_sc[g] = og

    if ng == 1:
        attn_group(0)
    else:
        pl.loop(0, ng)(attn_group)                    # bounded loop over head groups

    heads = [heads_sc[g].reshape(M, gw) for g in range(ng)]
    heads = heads[0] if ng == 1 else jnp.concatenate(heads, axis=-1)  # (M, D) bf16
    # Single full-K out projection on the MXU.
    attn = jnp.dot(heads, wo_ref[0], preferred_element_type=jnp.float32) + bo_ref[0]
    x = x + attn                                      # residual 1

    # ---- LayerNorm 2 + MLP (GELU tanh, f32 on the VPU/EUP) -------------------
    h2 = layer_norm(x, ln2g_ref[0], ln2b_ref[0])
    z = jnp.dot(h2.astype(jnp.bfloat16), w1_ref[0],
                preferred_element_type=jnp.float32) + b1_ref[0]
    c = jnp.float32(0.7978845608028654)               # sqrt(2/pi)
    z = 0.5 * z * (1.0 + jnp.tanh(c * (z + 0.044715 * z * z * z)))
    z = jnp.dot(z.astype(jnp.bfloat16), w2_ref[0],
                preferred_element_type=jnp.float32) + b2_ref[0]
    x = x + z                                         # residual 2

    out_ref[...] = x.reshape(Bb, S, D)                # carry / final result


# ----------------------------------------------------------------------------
# Wrapper: whole encoder in one pallas_call, grid = (B // Bb, num_layers).
# ----------------------------------------------------------------------------
def _vmem_capacity_bytes():
    try:
        return int(pltpu.get_tpu_info().vmem_capacity_bytes)
    except Exception:
        return 128 * 1024 * 1024


def _estimate_vmem_bytes(Bb, S, D, I, ng, gw):
    bf16, f32 = 2, 4
    M = Bb * S
    weights = 2 * ((4 * D * D + 2 * D * I) * bf16 + (9 * D + I) * f32)  # dbl-buffered
    mask = 2 * S * S * bf16 + S * S * f32
    io = 2 * 2 * Bb * S * D * f32                    # x + out blocks, dbl-buffered
    scratch = 4 * ng * Bb * S * gw * bf16            # qkv groups + head outputs
    work = (3 * M * D + 3 * M * D + 3 * Bb * S * S + M * I) * f32
    return weights + mask + io + scratch + work


def _pick_batch_block(B, S, D, I, ng, gw, cap, target=8):
    for bb in range(min(B, target), 0, -1):
        if B % bb == 0 and _estimate_vmem_bytes(bb, S, D, I, ng, gw) <= int(0.70 * cap):
            return bb
    return 1


def siglip2_encoder(x, document_ids, params, *, num_heads, head_dim, scale, eps,
                    batch_block=None):
    B, S, D = x.shape
    L = params["wqkv"].shape[0]
    I = params["w1"].shape[-1]

    hg, ng = _head_grouping(num_heads, head_dim)
    gw = hg * head_dim
    cap = _vmem_capacity_bytes()
    Bb = batch_block if batch_block is not None else \
        _pick_batch_block(B, S, D, I, ng, gw, cap)
    assert B % Bb == 0, f"batch {B} not divisible by batch block {Bb}"

    # Additive mask bias (bf16): 0 where same document, large negative otherwise.
    same = document_ids[:, None] == document_ids[None, :]
    bias = jnp.where(same, 0.0, -1e9).astype(jnp.bfloat16)

    x_spec = pl.BlockSpec((Bb, S, D), lambda b, l: (b, 0, 0))
    mask_spec = pl.BlockSpec((S, S), lambda b, l: (0, 0))

    def layer_spec(*dims):
        return pl.BlockSpec((1,) + dims, lambda b, l: (l, 0, 0))

    in_specs = [
        mask_spec,
        x_spec,
        layer_spec(1, D), layer_spec(1, D),           # ln1 gamma / beta
        layer_spec(D, 3 * D), layer_spec(1, 3 * D),   # fused qkv
        layer_spec(D, D), layer_spec(1, D),           # out proj
        layer_spec(1, D), layer_spec(1, D),           # ln2 gamma / beta
        layer_spec(D, I), layer_spec(1, I),           # fc1
        layer_spec(I, D), layer_spec(1, D),           # fc2
    ]
    out_spec = pl.BlockSpec((Bb, S, D), lambda b, l: (b, 0, 0))

    vmem_est = _estimate_vmem_bytes(Bb, S, D, I, ng, gw)
    vmem_limit = int(min(max(int(1.4 * vmem_est), 32 * 1024 * 1024),
                         int(0.85 * cap)))

    # Advisory cost estimate for XLA's surrounding schedule.
    weight_bytes = (4 * D * D + 2 * D * I) * 2 + (9 * D + I) * 4
    flops = (2 * B * L * S * (4 * D * D + 2 * D * I)
             + 4 * B * L * num_heads * S * S * head_dim)
    transcendentals = B * L * S * (I + num_heads * S)
    bytes_accessed = (B // Bb) * L * weight_bytes + 2 * B * S * D * 4 + S * S * 2

    kernel = functools.partial(
        fused_encoder_kernel,
        head_dim=head_dim, heads_per_group=hg, num_groups=ng,
        scale=scale, eps=eps,
    )

    return pl.pallas_call(
        kernel,
        out_shape=jax.ShapeDtypeStruct((B, S, D), jnp.float32),
        grid=(B // Bb, L),
        in_specs=in_specs,
        out_specs=out_spec,
        scratch_shapes=[
            pltpu.VMEM((3 * ng, Bb, S, gw), jnp.bfloat16),   # q/k/v, group-major
            pltpu.VMEM((ng, Bb, S, gw), jnp.bfloat16),       # per-group head outputs
        ],
        compiler_params=pltpu.CompilerParams(
            dimension_semantics=("parallel", "arbitrary"),
            vmem_limit_bytes=vmem_limit),
        cost_estimate=pl.CostEstimate(
            flops=int(flops),
            transcendentals=int(transcendentals),
            bytes_accessed=int(bytes_accessed)),
    )(bias, x,
      params["ln1_g"], params["ln1_b"],
      params["wqkv"], params["bqkv"],
      params["wo"], params["bo"],
      params["ln2_g"], params["ln2_b"],
      params["w1"], params["b1"],
      params["w2"], params["b2"])


# ----------------------------------------------------------------------------
# Pure-JAX f32 reference (mirrors the PyTorch eval-mode forward).
# ----------------------------------------------------------------------------
def reference_encoder(x, document_ids, params, *, num_heads, head_dim, scale, eps):
    B, S, D = x.shape
    L = params["wqkv"].shape[0]
    mask = document_ids[:, None] == document_ids[None, :]

    def ln(v, g, b):
        mu = v.mean(-1, keepdims=True)
        var = ((v - mu) ** 2).mean(-1, keepdims=True)
        return (v - mu) / jnp.sqrt(var + eps) * g + b

    h = x
    for l in range(L):
        wqkv = params["wqkv"][l].astype(jnp.float32)
        wo = params["wo"][l].astype(jnp.float32)
        w1 = params["w1"][l].astype(jnp.float32)
        w2 = params["w2"][l].astype(jnp.float32)

        res = h
        hs = ln(h, params["ln1_g"][l], params["ln1_b"][l])
        qkv = hs @ wqkv + params["bqkv"][l]
        q, k, v = qkv[..., :D], qkv[..., D:2 * D], qkv[..., 2 * D:]
        q = q.reshape(B, S, num_heads, head_dim).transpose(0, 2, 1, 3)
        k = k.reshape(B, S, num_heads, head_dim).transpose(0, 2, 1, 3)
        v = v.reshape(B, S, num_heads, head_dim).transpose(0, 2, 1, 3)
        s = jnp.einsum("bhqd,bhkd->bhqk", q, k) * scale
        s = jnp.where(mask[None, None], s, -1e30)
        p = jax.nn.softmax(s, axis=-1)
        a = jnp.einsum("bhqk,bhkd->bhqd", p, v)
        a = a.transpose(0, 2, 1, 3).reshape(B, S, D)
        a = a @ wo + params["bo"][l]
        h = res + a

        res = h
        hs = ln(h, params["ln2_g"][l], params["ln2_b"][l])
        z = hs @ w1 + params["b1"][l]
        c = 0.7978845608028654
        z = 0.5 * z * (1.0 + jnp.tanh(c * (z + 0.044715 * z ** 3)))
        z = z @ w2 + params["b2"][l]
        h = res + z
    return h


# ----------------------------------------------------------------------------
# Deterministic parameter construction (weights stacked over layers).
# ----------------------------------------------------------------------------
def init_params(key, L, D, I):
    ks = jax.random.split(key, 16)
    s = 0.02

    def nrm(k, shape, sc=s):
        return sc * jax.random.normal(k, shape, jnp.float32)

    wq = nrm(ks[0], (L, D, D))
    wk = nrm(ks[1], (L, D, D))
    wv = nrm(ks[2], (L, D, D))
    return {
        "ln1_g": 1.0 + 0.1 * jax.random.normal(ks[3], (L, 1, D), jnp.float32),
        "ln1_b": nrm(ks[4], (L, 1, D), 0.05),
        "wqkv": jnp.concatenate([wq, wk, wv], axis=-1).astype(jnp.bfloat16),
        "bqkv": nrm(ks[5], (L, 1, 3 * D)),
        "wo": nrm(ks[6], (L, D, D)).astype(jnp.bfloat16),
        "bo": nrm(ks[7], (L, 1, D)),
        "ln2_g": 1.0 + 0.1 * jax.random.normal(ks[8], (L, 1, D), jnp.float32),
        "ln2_b": nrm(ks[9], (L, 1, D), 0.05),
        "w1": nrm(ks[10], (L, D, I)).astype(jnp.bfloat16),
        "b1": nrm(ks[11], (L, 1, I)),
        "w2": nrm(ks[12], (L, I, D)).astype(jnp.bfloat16),
        "b2": nrm(ks[13], (L, 1, D)),
    }


if __name__ == "__main__":
    # Small config consistent with Siglip2VisionConfig structure.
    batch = 2
    seq = 8
    hidden = 32
    inter = 64
    num_layers = 2
    num_heads = 4
    head_dim = hidden // num_heads
    scale = head_dim ** -0.5
    eps = 1e-6

    key = jax.random.PRNGKey(0)
    k_x, k_p = jax.random.split(key)
    x = jax.random.normal(k_x, (batch, seq, hidden), jnp.float32)
    document_ids = jnp.array([0, 0, 0, 1, 1, 2, 2, 2], jnp.int32)
    params = init_params(k_p, num_layers, hidden, inter)

    out = siglip2_encoder(
        x, document_ids, params,
        num_heads=num_heads, head_dim=head_dim, scale=scale, eps=eps,
    )
    out = jax.block_until_ready(out)

    ref = reference_encoder(
        x, document_ids, params,
        num_heads=num_heads, head_dim=head_dim, scale=scale, eps=eps,
    )
    assert out.shape == (batch, seq, hidden)
    max_diff = float(jnp.max(jnp.abs(out - ref)))
    assert jnp.allclose(out, ref, rtol=2e-2, atol=2e-2), \
        f"mismatch vs reference (max abs diff {max_diff})"

    print("KERNEL_OK")
</pallas_src>

<mosaic_0001>
module attributes {stable_mosaic.version = 11 : i64} {
  func.func @fused_encoder_kernel(%arg0: i32, %arg1: i32, %arg2: memref<8x8xbf16, #tpu.memory_space<vmem>>, %arg3: memref<2x8x32xf32, #tpu.memory_space<vmem>>, %arg4: memref<1x1x32xf32, #tpu.memory_space<vmem>>, %arg5: memref<1x1x32xf32, #tpu.memory_space<vmem>>, %arg6: memref<1x32x96xbf16, #tpu.memory_space<vmem>>, %arg7: memref<1x1x96xf32, #tpu.memory_space<vmem>>, %arg8: memref<1x32x32xbf16, #tpu.memory_space<vmem>>, %arg9: memref<1x1x32xf32, #tpu.memory_space<vmem>>, %arg10: memref<1x1x32xf32, #tpu.memory_space<vmem>>, %arg11: memref<1x1x32xf32, #tpu.memory_space<vmem>>, %arg12: memref<1x32x64xbf16, #tpu.memory_space<vmem>>, %arg13: memref<1x1x64xf32, #tpu.memory_space<vmem>>, %arg14: memref<1x64x32xbf16, #tpu.memory_space<vmem>>, %arg15: memref<1x1x32xf32, #tpu.memory_space<vmem>>, %arg16: memref<2x8x32xf32, #tpu.memory_space<vmem>>, %arg17: memref<3x2x8x32xbf16, #tpu.memory_space<vmem>>, %arg18: memref<1x2x8x32xbf16, #tpu.memory_space<vmem>>) attributes {dimension_semantics = [#tpu.dimension_semantics<parallel>, #tpu.dimension_semantics<arbitrary>], iteration_bounds = array<i64: 1, 2>, scalar_prefetch = 0 : i64, scratch_operands = 2 : i64, tpu.core_type = #tpu.core_type<tc>, window_params = [{pipeline_mode = #tpu.pipeline_mode<synchronous>, transform_indices = @transform_0, window_bounds = array<i64: 8, 8>}, {transform_indices = @transform_1, window_bounds = array<i64: 2, 8, 32>}, {transform_indices = @transform_2, window_bounds = array<i64: 1, 1, 32>}, {transform_indices = @transform_3, window_bounds = array<i64: 1, 1, 32>}, {transform_indices = @transform_4, window_bounds = array<i64: 1, 32, 96>}, {transform_indices = @transform_5, window_bounds = array<i64: 1, 1, 96>}, {transform_indices = @transform_6, window_bounds = array<i64: 1, 32, 32>}, {transform_indices = @transform_7, window_bounds = array<i64: 1, 1, 32>}, {transform_indices = @transform_8, window_bounds = array<i64: 1, 1, 32>}, {transform_indices = @transform_9, window_bounds = array<i64: 1, 1, 32>}, {transform_indices = @transform_10, window_bounds = array<i64: 1, 32, 64>}, {transform_indices = @transform_11, window_bounds = array<i64: 1, 1, 64>}, {transform_indices = @transform_12, window_bounds = array<i64: 1, 64, 32>}, {transform_indices = @transform_13, window_bounds = array<i64: 1, 1, 32>}, {transform_indices = @transform_14, window_bounds = array<i64: 2, 8, 32>}]} {
    %c0_i32 = arith.constant 0 : i32
    %0 = arith.cmpi eq, %arg1, %c0_i32 : i32
    %1 = arith.extui %0 : i1 to i32
    %c0_i32_0 = arith.constant 0 : i32
    %2 = arith.cmpi ne, %1, %c0_i32_0 : i32
    scf.if %2 {
      %c0_108 = arith.constant 0 : index
      %c0_109 = arith.constant 0 : index
      %c0_110 = arith.constant 0 : index
      %220 = vector.load %arg3[%c0_108, %c0_109, %c0_110] : memref<2x8x32xf32, #tpu.memory_space<vmem>>, vector<2x8x32xf32>
      %c0_111 = arith.constant 0 : index
      %c0_112 = arith.constant 0 : index
      %c0_113 = arith.constant 0 : index
      %221 = vector.load %arg16[%c0_111, %c0_112, %c0_113] : memref<2x8x32xf32, #tpu.memory_space<vmem>>, vector<2x8x32xf32>
      tpu.vector_store %arg16[%c0_111, %c0_112, %c0_113], %220 {strides = array<i32>} : memref<2x8x32xf32, #tpu.memory_space<vmem>>, vector<2x8x32xf32>,
    } else {
    }
    %c0 = arith.constant 0 : index
    %c0_1 = arith.constant 0 : index
    %c0_2 = arith.constant 0 : index
    %3 = vector.load %arg16[%c0, %c0_1, %c0_2] : memref<2x8x32xf32, #tpu.memory_space<vmem>>, vector<2x8x32xf32>
    %4 = vector.shape_cast %3 : vector<2x8x32xf32> to vector<16x32xf32>
    %c0_3 = arith.constant 0 : index
    %c0_4 = arith.constant 0 : index
    %c0_5 = arith.constant 0 : index
    %5 = vector.load %arg4[%c0_3, %c0_4, %c0_5] : memref<1x1x32xf32, #tpu.memory_space<vmem>>, vector<1x1x32xf32>
    %6 = vector.shape_cast %5 : vector<1x1x32xf32> to vector<1x32xf32>
    %c0_6 = arith.constant 0 : index
    %c0_7 = arith.constant 0 : index
    %c0_8 = arith.constant 0 : index
    %7 = vector.load %arg5[%c0_6, %c0_7, %c0_8] : memref<1x1x32xf32, #tpu.memory_space<vmem>>, vector<1x1x32xf32>
    %8 = vector.shape_cast %7 : vector<1x1x32xf32> to vector<1x32xf32>
    %cst = arith.constant dense<0.000000e+00> : vector<16xf32>
    %9 = vector.multi_reduction <add>, %4, %cst [1] : vector<16x32xf32> to vector<16xf32>
    %10 = vector.shape_cast %9 : vector<16xf32> to vector<16x1xf32>
    %11 = arith.mulf %4, %4 : vector<16x32xf32>
    %cst_9 = arith.constant dense<0.000000e+00> : vector<16xf32>
    %12 = vector.multi_reduction <add>, %11, %cst_9 [1] : vector<16x32xf32> to vector<16xf32>
    %13 = vector.shape_cast %12 : vector<16xf32> to vector<16x1xf32>
    %cst_10 = arith.constant 3.125000e-02 : f32
    %14 = vector.broadcast %cst_10 : f32 to vector<16x1xf32>
    %15 = arith.mulf %10, %14 : vector<16x1xf32>
    %cst_11 = arith.constant 3.125000e-02 : f32
    %16 = vector.broadcast %cst_11 : f32 to vector<16x1xf32>
    %17 = arith.mulf %13, %16 : vector<16x1xf32>
    %18 = arith.mulf %15, %15 : vector<16x1xf32>
    %19 = arith.subf %17, %18 : vector<16x1xf32>
    %20 = vector.broadcast %15 : vector<16x1xf32> to vector<16x32xf32>
    %21 = arith.subf %4, %20 : vector<16x32xf32>
    %cst_12 = arith.constant 9.99999997E-7 : f32
    %22 = vector.broadcast %cst_12 : f32 to vector<16x1xf32>
    %23 = arith.addf %19, %22 : vector<16x1xf32>
    %24 = math.rsqrt %23 : vector<16x1xf32>
    %25 = vector.broadcast %24 : vector<16x1xf32> to vector<16x32xf32>
    %26 = arith.mulf %21, %25 : vector<16x32xf32>
    %27 = vector.broadcast %6 : vector<1x32xf32> to vector<16x32xf32>
    %28 = arith.mulf %26, %27 : vector<16x32xf32>
    %29 = vector.broadcast %8 : vector<1x32xf32> to vector<16x32xf32>
    %30 = arith.addf %28, %29 : vector<16x32xf32>
    %31 = arith.truncf %30 : vector<16x32xf32> to vector<16x32xbf16>
    %c0_13 = arith.constant 0 : index
    %c0_14 = arith.constant 0 : index
    %c0_15 = arith.constant 0 : index
    %32 = vector.load %arg6[%c0_13, %c0_14, %c0_15] : memref<1x32x96xbf16, #tpu.memory_space<vmem>>, vector<1x32x96xbf16>
    %33 = vector.shape_cast %32 : vector<1x32x96xbf16> to vector<32x96xbf16>
    %cst_16 = arith.constant dense<0.000000e+00> : vector<16x96xf32>
    %34 = tpu.matmul %31, %33, %cst_16 {dimension_numbers = #tpu.dot_dimension_numbers<[1], [0], [0], [1], [0, 0, 1, 1], [], []>} : vector<16x32xbf16>, vector<32x96xbf16>, vector<16x96xf32> -> vector<16x96xf32>
    %c0_17 = arith.constant 0 : index
    %c0_18 = arith.constant 0 : index
    %c0_19 = arith.constant 0 : index
    %35 = vector.load %arg7[%c0_17, %c0_18, %c0_19] : memref<1x1x96xf32, #tpu.memory_space<vmem>>, vector<1x1x96xf32>
    %36 = vector.shape_cast %35 : vector<1x1x96xf32> to vector<1x96xf32>
    %37 = vector.broadcast %36 : vector<1x96xf32> to vector<16x96xf32>
    %38 = arith.addf %34, %37 : vector<16x96xf32>
    %39 = vector.extract_strided_slice %38 {offsets = [0, 0], sizes = [16, 32], strides = [1, 1]} : vector<16x96xf32> to vector<16x32xf32>
    %cst_20 = arith.constant 0.353553385 : f32
    %40 = vector.broadcast %cst_20 : f32 to vector<16x32xf32>
    %41 = arith.mulf %39, %40 : vector<16x32xf32>
    %42 = arith.truncf %41 : vector<16x32xf32> to vector<16x32xbf16>
    %43 = vector.shape_cast %42 : vector<16x32xbf16> to vector<2x8x32xbf16>
    %c0_21 = arith.constant 0 : index
    %c0_22 = arith.constant 0 : index
    %c0_23 = arith.constant 0 : index
    %c0_24 = arith.constant 0 : index
    %44 = vector.load %arg17[%c0_21, %c0_22, %c0_23, %c0_24] : memref<3x2x8x32xbf16, #tpu.memory_space<vmem>>, vector<1x2x8x32xbf16>
    %45 = vector.shape_cast %44 : vector<1x2x8x32xbf16> to vector<2x8x32xbf16>
    %46 = vector.shape_cast %43 : vector<2x8x32xbf16> to vector<1x2x8x32xbf16>
    tpu.vector_store %arg17[%c0_21, %c0_22, %c0_23, %c0_24], %46 {strides = array<i32>} : memref<3x2x8x32xbf16, #tpu.memory_space<vmem>>, vector<1x2x8x32xbf16>,
    %47 = vector.extract_strided_slice %38 {offsets = [0, 32], sizes = [16, 32], strides = [1, 1]} : vector<16x96xf32> to vector<16x32xf32>
    %48 = arith.truncf %47 : vector<16x32xf32> to vector<16x32xbf16>
    %49 = vector.shape_cast %48 : vector<16x32xbf16> to vector<2x8x32xbf16>
    %c1 = arith.constant 1 : index
    %c0_25 = arith.constant 0 : index
    %c0_26 = arith.constant 0 : index
    %c0_27 = arith.constant 0 : index
    %50 = vector.load %arg17[%c1, %c0_25, %c0_26, %c0_27] : memref<3x2x8x32xbf16, #tpu.memory_space<vmem>>, vector<1x2x8x32xbf16>
    %51 = vector.shape_cast %50 : vector<1x2x8x32xbf16> to vector<2x8x32xbf16>
    %52 = vector.shape_cast %49 : vector<2x8x32xbf16> to vector<1x2x8x32xbf16>
    tpu.vector_store %arg17[%c1, %c0_25, %c0_26, %c0_27], %52 {strides = array<i32>} : memref<3x2x8x32xbf16, #tpu.memory_space<vmem>>, vector<1x2x8x32xbf16>,
    %53 = vector.extract_strided_slice %38 {offsets = [0, 64], sizes = [16, 32], strides = [1, 1]} : vector<16x96xf32> to vector<16x32xf32>
    %54 = arith.truncf %53 : vector<16x32xf32> to vector<16x32xbf16>
    %55 = vector.shape_cast %54 : vector<16x32xbf16> to vector<2x8x32xbf16>
    %c2 = arith.constant 2 : index
    %c0_28 = arith.constant 0 : index
    %c0_29 = arith.constant 0 : index
    %c0_30 = arith.constant 0 : index
    %56 = vector.load %arg17[%c2, %c0_28, %c0_29, %c0_30] : memref<3x2x8x32xbf16, #tpu.memory_space<vmem>>, vector<1x2x8x32xbf16>
    %57 = vector.shape_cast %56 : vector<1x2x8x32xbf16> to vector<2x8x32xbf16>
    %58 = vector.shape_cast %55 : vector<2x8x32xbf16> to vector<1x2x8x32xbf16>
    tpu.vector_store %arg17[%c2, %c0_28, %c0_29, %c0_30], %58 {strides = array<i32>} : memref<3x2x8x32xbf16, #tpu.memory_space<vmem>>, vector<1x2x8x32xbf16>,
    %c0_31 = arith.constant 0 : index
    %c0_32 = arith.constant 0 : index
    %59 = vector.load %arg2[%c0_31, %c0_32] : memref<8x8xbf16, #tpu.memory_space<vmem>>, vector<8x8xbf16>
    %60 = arith.extf %59 : vector<8x8xbf16> to vector<8x8xf32>
    %c0_33 = arith.constant 0 : index
    %c0_34 = arith.constant 0 : index
    %c0_35 = arith.constant 0 : index
    %c0_36 = arith.constant 0 : index
    %61 = vector.load %arg17[%c0_33, %c0_34, %c0_35, %c0_36] : memref<3x2x8x32xbf16, #tpu.memory_space<vmem>>, vector<1x2x8x32xbf16>
    %62 = vector.shape_cast %61 : vector<1x2x8x32xbf16> to vector<2x8x32xbf16>
    %c1_37 = arith.constant 1 : index
    %c0_38 = arith.constant 0 : index
    %c0_39 = arith.constant 0 : index
    %c0_40 = arith.constant 0 : index
    %63 = vector.load %arg17[%c1_37, %c0_38, %c0_39, %c0_40] : memref<3x2x8x32xbf16, #tpu.memory_space<vmem>>, vector<1x2x8x32xbf16>
    %64 = vector.shape_cast %63 : vector<1x2x8x32xbf16> to vector<2x8x32xbf16>
    %c2_41 = arith.constant 2 : index
    %c0_42 = arith.constant 0 : index
    %c0_43 = arith.constant 0 : index
    %c0_44 = arith.constant 0 : index
    %65 = vector.load %arg17[%c2_41, %c0_42, %c0_43, %c0_44] : memref<3x2x8x32xbf16, #tpu.memory_space<vmem>>, vector<1x2x8x32xbf16>
    %66 = vector.shape_cast %65 : vector<1x2x8x32xbf16> to vector<2x8x32xbf16>
    %67 = vector.extract_strided_slice %62 {offsets = [0, 0, 0], sizes = [2, 8, 8], strides = [1, 1, 1]} : vector<2x8x32xbf16> to vector<2x8x8xbf16>
    %68 = vector.extract_strided_slice %64 {offsets = [0, 0, 0], sizes = [2, 8, 8], strides = [1, 1, 1]} : vector<2x8x32xbf16> to vector<2x8x8xbf16>
    %69 = vector.extract_strided_slice %66 {offsets = [0, 0, 0], sizes = [2, 8, 8], strides = [1, 1, 1]} : vector<2x8x32xbf16> to vector<2x8x8xbf16>
    %cst_45 = arith.constant dense<0.000000e+00> : vector<2x8x8xf32>
    %70 = tpu.matmul %67, %68, %cst_45 {dimension_numbers = #tpu.dot_dimension_numbers<[2], [2], [1], [1], [0, 0, 0, 1, 1, 1], [0], [0]>} : vector<2x8x8xbf16>, vector<2x8x8xbf16>, vector<2x8x8xf32> -> vector<2x8x8xf32>
    %71 = vector.shape_cast %60 : vector<8x8xf32> to vector<1x8x8xf32>
    %72 = vector.broadcast %71 : vector<1x8x8xf32> to vector<2x8x8xf32>
    %73 = arith.addf %70, %72 : vector<2x8x8xf32>
    %cst_46 = arith.constant dense<0xFF800000> : vector<2x8xf32>
    %74 = vector.multi_reduction <maximumf>, %73, %cst_46 [2] : vector<2x8x8xf32> to vector<2x8xf32>
    %75 = vector.shape_cast %74 : vector<2x8xf32> to vector<2x8x1xf32>
    %76 = vector.broadcast %75 : vector<2x8x1xf32> to vector<2x8x8xf32>
    %77 = arith.subf %73, %76 : vector<2x8x8xf32>
    %78 = math.exp %77 : vector<2x8x8xf32>
    %cst_47 = arith.constant dense<0.000000e+00> : vector<2x8xf32>
    %79 = vector.multi_reduction <add>, %78, %cst_47 [2] : vector<2x8x8xf32> to vector<2x8xf32>
    %80 = vector.shape_cast %79 : vector<2x8xf32> to vector<2x8x1xf32>
    %81 = tpu.reciprocal %80 {approx = true} : vector<2x8x1xf32> -> vector<2x8x1xf32>
    %82 = vector.broadcast %81 : vector<2x8x1xf32> to vector<2x8x8xf32>
    %83 = arith.mulf %78, %82 : vector<2x8x8xf32>
    %84 = arith.truncf %83 : vector<2x8x8xf32> to vector<2x8x8xbf16>
    %cst_48 = arith.constant dense<0.000000e+00> : vector<2x8x8xf32>
    %85 = tpu.matmul %84, %69, %cst_48 {dimension_numbers = #tpu.dot_dimension_numbers<[2], [1], [1], [2], [0, 0, 0, 1, 1, 2], [0], [0]>} : vector<2x8x8xbf16>, vector<2x8x8xbf16>, vector<2x8x8xf32> -> vector<2x8x8xf32>
    %86 = arith.truncf %85 : vector<2x8x8xf32> to vector<2x8x8xbf16>
    %87 = vector.extract_strided_slice %62 {offsets = [0, 0, 8], sizes = [2, 8, 8], strides = [1, 1, 1]} : vector<2x8x32xbf16> to vector<2x8x8xbf16>
    %88 = vector.extract_strided_slice %64 {offsets = [0, 0, 8], sizes = [2, 8, 8], strides = [1, 1, 1]} : vector<2x8x32xbf16> to vector<2x8x8xbf16>
    %89 = vector.extract_strided_slice %66 {offsets = [0, 0, 8], sizes = [2, 8, 8], strides = [1, 1, 1]} : vector<2x8x32xbf16> to vector<2x8x8xbf16>
    %cst_49 = arith.constant dense<0.000000e+00> : vector<2x8x8xf32>
    %90 = tpu.matmul %87, %88, %cst_49 {dimension_numbers = #tpu.dot_dimension_numbers<[2], [2], [1], [1], [0, 0, 0, 1, 1, 1], [0], [0]>} : vector<2x8x8xbf16>, vector<2x8x8xbf16>, vector<2x8x8xf32> -> vector<2x8x8xf32>
    %91 = vector.shape_cast %60 : vector<8x8xf32> to vector<1x8x8xf32>
    %92 = vector.broadcast %91 : vector<1x8x8xf32> to vector<2x8x8xf32>
    %93 = arith.addf %90, %92 : vector<2x8x8xf32>
    %cst_50 = arith.constant dense<0xFF800000> : vector<2x8xf32>
    %94 = vector.multi_reduction <maximumf>, %93, %cst_50 [2] : vector<2x8x8xf32> to vector<2x8xf32>
    %95 = vector.shape_cast %94 : vector<2x8xf32> to vector<2x8x1xf32>
    %96 = vector.broadcast %95 : vector<2x8x1xf32> to vector<2x8x8xf32>
    %97 = arith.subf %93, %96 : vector<2x8x8xf32>
    %98 = math.exp %97 : vector<2x8x8xf32>
    %cst_51 = arith.constant dense<0.000000e+00> : vector<2x8xf32>
    %99 = vector.multi_reduction <add>, %98, %cst_51 [2] : vector<2x8x8xf32> to vector<2x8xf32>
    %100 = vector.shape_cast %99 : vector<2x8xf32> to vector<2x8x1xf32>
    %101 = tpu.reciprocal %100 {approx = true} : vector<2x8x1xf32> -> vector<2x8x1xf32>
    %102 = vector.broadcast %101 : vector<2x8x1xf32> to vector<2x8x8xf32>
    %103 = arith.mulf %98, %102 : vector<2x8x8xf32>
    %104 = arith.truncf %103 : vector<2x8x8xf32> to vector<2x8x8xbf16>
    %cst_52 = arith.constant dense<0.000000e+00> : vector<2x8x8xf32>
    %105 = tpu.matmul %104, %89, %cst_52 {dimension_numbers = #tpu.dot_dimension_numbers<[2], [1], [1], [2], [0, 0, 0, 1, 1, 2], [0], [0]>} : vector<2x8x8xbf16>, vector<2x8x8xbf16>, vector<2x8x8xf32> -> vector<2x8x8xf32>
    %106 = arith.truncf %105 : vector<2x8x8xf32> to vector<2x8x8xbf16>
    %107 = vector.extract_strided_slice %62 {offsets = [0, 0, 16], sizes = [2, 8, 8], strides = [1, 1, 1]} : vector<2x8x32xbf16> to vector<2x8x8xbf16>
    %108 = vector.extract_strided_slice %64 {offsets = [0, 0, 16], sizes = [2, 8, 8], strides = [1, 1, 1]} : vector<2x8x32xbf16> to vector<2x8x8xbf16>
    %109 = vector.extract_strided_slice %66 {offsets = [0, 0, 16], sizes = [2, 8, 8], strides = [1, 1, 1]} : vector<2x8x32xbf16> to vector<2x8x8xbf16>
    %cst_53 = arith.constant dense<0.000000e+00> : vector<2x8x8xf32>
    %110 = tpu.matmul %107, %108, %cst_53 {dimension_numbers = #tpu.dot_dimension_numbers<[2], [2], [1], [1], [0, 0, 0, 1, 1, 1], [0], [0]>} : vector<2x8x8xbf16>, vector<2x8x8xbf16>, vector<2x8x8xf32> -> vector<2x8x8xf32>
    %111 = vector.shape_cast %60 : vector<8x8xf32> to vector<1x8x8xf32>
    %112 = vector.broadcast %111 : vector<1x8x8xf32> to vector<2x8x8xf32>
    %113 = arith.addf %110, %112 : vector<2x8x8xf32>
    %cst_54 = arith.constant dense<0xFF800000> : vector<2x8xf32>
    %114 = vector.multi_reduction <maximumf>, %113, %cst_54 [2] : vector<2x8x8xf32> to vector<2x8xf32>
    %115 = vector.shape_cast %114 : vector<2x8xf32> to vector<2x8x1xf32>
    %116 = vector.broadcast %115 : vector<2x8x1xf32> to vector<2x8x8xf32>
    %117 = arith.subf %113, %116 : vector<2x8x8xf32>
    %118 = math.exp %117 : vector<2x8x8xf32>
    %cst_55 = arith.constant dense<0.000000e+00> : vector<2x8xf32>
    %119 = vector.multi_reduction <add>, %118, %cst_55 [2] : vector<2x8x8xf32> to vector<2x8xf32>
    %120 = vector.shape_cast %119 : vector<2x8xf32> to vector<2x8x1xf32>
    %121 = tpu.reciprocal %120 {approx = true} : vector<2x8x1xf32> -> vector<2x8x1xf32>
    %122 = vector.broadcast %121 : vector<2x8x1xf32> to vector<2x8x8xf32>
    %123 = arith.mulf %118, %122 : vector<2x8x8xf32>
    %124 = arith.truncf %123 : vector<2x8x8xf32> to vector<2x8x8xbf16>
    %cst_56 = arith.constant dense<0.000000e+00> : vector<2x8x8xf32>
    %125 = tpu.matmul %124, %109, %cst_56 {dimension_numbers = #tpu.dot_dimension_numbers<[2], [1], [1], [2], [0, 0, 0, 1, 1, 2], [0], [0]>} : vector<2x8x8xbf16>, vector<2x8x8xbf16>, vector<2x8x8xf32> -> vector<2x8x8xf32>
    %126 = arith.truncf %125 : vector<2x8x8xf32> to vector<2x8x8xbf16>
    %127 = vector.extract_strided_slice %62 {offsets = [0, 0, 24], sizes = [2, 8, 8], strides = [1, 1, 1]} : vector<2x8x32xbf16> to vector<2x8x8xbf16>
    %128 = vector.extract_strided_slice %64 {offsets = [0, 0, 24], sizes = [2, 8, 8], strides = [1, 1, 1]} : vector<2x8x32xbf16> to vector<2x8x8xbf16>
    %129 = vector.extract_strided_slice %66 {offsets = [0, 0, 24], sizes = [2, 8, 8], strides = [1, 1, 1]} : vector<2x8x32xbf16> to vector<2x8x8xbf16>
    %cst_57 = arith.constant dense<0.000000e+00> : vector<2x8x8xf32>
    %130 = tpu.matmul %127, %128, %cst_57 {dimension_numbers = #tpu.dot_dimension_numbers<[2], [2], [1], [1], [0, 0, 0, 1, 1, 1], [0], [0]>} : vector<2x8x8xbf16>, vector<2x8x8xbf16>, vector<2x8x8xf32> -> vector<2x8x8xf32>
    %131 = vector.shape_cast %60 : vector<8x8xf32> to vector<1x8x8xf32>
    %132 = vector.broadcast %131 : vector<1x8x8xf32> to vector<2x8x8xf32>
    %133 = arith.addf %130, %132 : vector<2x8x8xf32>
    %cst_58 = arith.constant dense<0xFF800000> : vector<2x8xf32>
    %134 = vector.multi_reduction <maximumf>, %133, %cst_58 [2] : vector<2x8x8xf32> to vector<2x8xf32>
    %135 = vector.shape_cast %134 : vector<2x8xf32> to vector<2x8x1xf32>
    %136 = vector.broadcast %135 : vector<2x8x1xf32> to vector<2x8x8xf32>
    %137 = arith.subf %133, %136 : vector<2x8x8xf32>
    %138 = math.exp %137 : vector<2x8x8xf32>
    %cst_59 = arith.constant dense<0.000000e+00> : vector<2x8xf32>
    %139 = vector.multi_reduction <add>, %138, %cst_59 [2] : vector<2x8x8xf32> to vector<2x8xf32>
    %140 = vector.shape_cast %139 : vector<2x8xf32> to vector<2x8x1xf32>
    %141 = tpu.reciprocal %140 {approx = true} : vector<2x8x1xf32> -> vector<2x8x1xf32>
    %142 = vector.broadcast %141 : vector<2x8x1xf32> to vector<2x8x8xf32>
    %143 = arith.mulf %138, %142 : vector<2x8x8xf32>
    %144 = arith.truncf %143 : vector<2x8x8xf32> to vector<2x8x8xbf16>
    %cst_60 = arith.constant dense<0.000000e+00> : vector<2x8x8xf32>
    %145 = tpu.matmul %144, %129, %cst_60 {dimension_numbers = #tpu.dot_dimension_numbers<[2], [1], [1], [2], [0, 0, 0, 1, 1, 2], [0], [0]>} : vector<2x8x8xbf16>, vector<2x8x8xbf16>, vector<2x8x8xf32> -> vector<2x8x8xf32>
    %146 = arith.truncf %145 : vector<2x8x8xf32> to vector<2x8x8xbf16>
    %147 = tpu.concatenate %86, %106, %126, %146 in 2 : vector<2x8x8xbf16>, vector<2x8x8xbf16>, vector<2x8x8xbf16>, vector<2x8x8xbf16> -> vector<2x8x32xbf16>
    %c0_61 = arith.constant 0 : index
    %c0_62 = arith.constant 0 : index
    %c0_63 = arith.constant 0 : index
    %c0_64 = arith.constant 0 : index
    %148 = vector.load %arg18[%c0_61, %c0_62, %c0_63, %c0_64] : memref<1x2x8x32xbf16, #tpu.memory_space<vmem>>, vector<1x2x8x32xbf16>
    %149 = vector.shape_cast %148 : vector<1x2x8x32xbf16> to vector<2x8x32xbf16>
    %150 = vector.shape_cast %147 : vector<2x8x32xbf16> to vector<1x2x8x32xbf16>
    tpu.vector_store %arg18[%c0_61, %c0_62, %c0_63, %c0_64], %150 {strides = array<i32>} : memref<1x2x8x32xbf16, #tpu.memory_space<vmem>>, vector<1x2x8x32xbf16>,
    %c0_65 = arith.constant 0 : index
    %c0_66 = arith.constant 0 : index
    %c0_67 = arith.constant 0 : index
    %c0_68 = arith.constant 0 : index
    %151 = vector.load %arg18[%c0_65, %c0_66, %c0_67, %c0_68] : memref<1x2x8x32xbf16, #tpu.memory_space<vmem>>, vector<1x2x8x32xbf16>
    %152 = vector.shape_cast %151 : vector<1x2x8x32xbf16> to vector<2x8x32xbf16>
    %153 = vector.shape_cast %152 : vector<2x8x32xbf16> to vector<16x32xbf16>
    %c0_69 = arith.constant 0 : index
    %c0_70 = arith.constant 0 : index
    %c0_71 = arith.constant 0 : index
    %154 = vector.load %arg8[%c0_69, %c0_70, %c0_71] : memref<1x32x32xbf16, #tpu.memory_space<vmem>>, vector<1x32x32xbf16>
    %155 = vector.shape_cast %154 : vector<1x32x32xbf16> to vector<32x32xbf16>
    %cst_72 = arith.constant dense<0.000000e+00> : vector<16x32xf32>
    %156 = tpu.matmul %153, %155, %cst_72 {dimension_numbers = #tpu.dot_dimension_numbers<[1], [0], [0], [1], [0, 0, 1, 1], [], []>} : vector<16x32xbf16>, vector<32x32xbf16>, vector<16x32xf32> -> vector<16x32xf32>
    %c0_73 = arith.constant 0 : index
    %c0_74 = arith.constant 0 : index
    %c0_75 = arith.constant 0 : index
    %157 = vector.load %arg9[%c0_73, %c0_74, %c0_75] : memref<1x1x32xf32, #tpu.memory_space<vmem>>, vector<1x1x32xf32>
    %158 = vector.shape_cast %157 : vector<1x1x32xf32> to vector<1x32xf32>
    %159 = vector.broadcast %158 : vector<1x32xf32> to vector<16x32xf32>
    %160 = arith.addf %156, %159 : vector<16x32xf32>
    %161 = arith.addf %4, %160 : vector<16x32xf32>
    %c0_76 = arith.constant 0 : index
    %c0_77 = arith.constant 0 : index
    %c0_78 = arith.constant 0 : index
    %162 = vector.load %arg10[%c0_76, %c0_77, %c0_78] : memref<1x1x32xf32, #tpu.memory_space<vmem>>, vector<1x1x32xf32>
    %163 = vector.shape_cast %162 : vector<1x1x32xf32> to vector<1x32xf32>
    %c0_79 = arith.constant 0 : index
    %c0_80 = arith.constant 0 : index
    %c0_81 = arith.constant 0 : index
    %164 = vector.load %arg11[%c0_79, %c0_80, %c0_81] : memref<1x1x32xf32, #tpu.memory_space<vmem>>, vector<1x1x32xf32>
    %165 = vector.shape_cast %164 : vector<1x1x32xf32> to vector<1x32xf32>
    %cst_82 = arith.constant dense<0.000000e+00> : vector<16xf32>
    %166 = vector.multi_reduction <add>, %161, %cst_82 [1] : vector<16x32xf32> to vector<16xf32>
    %167 = vector.shape_cast %166 : vector<16xf32> to vector<16x1xf32>
    %168 = arith.mulf %161, %161 : vector<16x32xf32>
    %cst_83 = arith.constant dense<0.000000e+00> : vector<16xf32>
    %169 = vector.multi_reduction <add>, %168, %cst_83 [1] : vector<16x32xf32> to vector<16xf32>
    %170 = vector.shape_cast %169 : vector<16xf32> to vector<16x1xf32>
    %cst_84 = arith.constant 3.125000e-02 : f32
    %171 = vector.broadcast %cst_84 : f32 to vector<16x1xf32>
    %172 = arith.mulf %167, %171 : vector<16x1xf32>
    %cst_85 = arith.constant 3.125000e-02 : f32
    %173 = vector.broadcast %cst_85 : f32 to vector<16x1xf32>
    %174 = arith.mulf %170, %173 : vector<16x1xf32>
    %175 = arith.mulf %172, %172 : vector<16x1xf32>
    %176 = arith.subf %174, %175 : vector<16x1xf32>
    %177 = vector.broadcast %172 : vector<16x1xf32> to vector<16x32xf32>
    %178 = arith.subf %161, %177 : vector<16x32xf32>
    %cst_86 = arith.constant 9.99999997E-7 : f32
    %179 = vector.broadcast %cst_86 : f32 to vector<16x1xf32>
    %180 = arith.addf %176, %179 : vector<16x1xf32>
    %181 = math.rsqrt %180 : vector<16x1xf32>
    %182 = vector.broadcast %181 : vector<16x1xf32> to vector<16x32xf32>
    %183 = arith.mulf %178, %182 : vector<16x32xf32>
    %184 = vector.broadcast %163 : vector<1x32xf32> to vector<16x32xf32>
    %185 = arith.mulf %183, %184 : vector<16x32xf32>
    %186 = vector.broadcast %165 : vector<1x32xf32> to vector<16x32xf32>
    %187 = arith.addf %185, %186 : vector<16x32xf32>
    %188 = arith.truncf %187 : vector<16x32xf32> to vector<16x32xbf16>
    %c0_87 = arith.constant 0 : index
    %c0_88 = arith.constant 0 : index
    %c0_89 = arith.constant 0 : index
    %189 = vector.load %arg12[%c0_87, %c0_88, %c0_89] : memref<1x32x64xbf16, #tpu.memory_space<vmem>>, vector<1x32x64xbf16>
    %190 = vector.shape_cast %189 : vector<1x32x64xbf16> to vector<32x64xbf16>
    %cst_90 = arith.constant dense<0.000000e+00> : vector<16x64xf32>
    %191 = tpu.matmul %188, %190, %cst_90 {dimension_numbers = #tpu.dot_dimension_numbers<[1], [0], [0], [1], [0, 0, 1, 1], [], []>} : vector<16x32xbf16>, vector<32x64xbf16>, vector<16x64xf32> -> vector<16x64xf32>
    %c0_91 = arith.constant 0 : index
    %c0_92 = arith.constant 0 : index
    %c0_93 = arith.constant 0 : index
    %192 = vector.load %arg13[%c0_91, %c0_92, %c0_93] : memref<1x1x64xf32, #tpu.memory_space<vmem>>, vector<1x1x64xf32>
    %193 = vector.shape_cast %192 : vector<1x1x64xf32> to vector<1x64xf32>
    %194 = vector.broadcast %193 : vector<1x64xf32> to vector<16x64xf32>
    %195 = arith.addf %191, %194 : vector<16x64xf32>
    %cst_94 = arith.constant 5.000000e-01 : f32
    %196 = vector.broadcast %cst_94 : f32 to vector<16x64xf32>
    %197 = arith.mulf %196, %195 : vector<16x64xf32>
    %cst_95 = arith.constant 4.471500e-02 : f32
    %198 = vector.broadcast %cst_95 : f32 to vector<16x64xf32>
    %199 = arith.mulf %198, %195 : vector<16x64xf32>
    %200 = arith.mulf %199, %195 : vector<16x64xf32>
    %201 = arith.mulf %200, %195 : vector<16x64xf32>
    %202 = arith.addf %195, %201 : vector<16x64xf32>
    %cst_96 = arith.constant 0.797884583 : f32
    %203 = vector.broadcast %cst_96 : f32 to vector<16x64xf32>
    %204 = arith.mulf %203, %202 : vector<16x64xf32>
    %205 = math.tanh %204 : vector<16x64xf32>
    %cst_97 = arith.constant 1.000000e+00 : f32
    %206 = vector.broadcast %cst_97 : f32 to vector<16x64xf32>
    %207 = arith.addf %206, %205 : vector<16x64xf32>
    %208 = arith.mulf %197, %207 : vector<16x64xf32>
    %209 = arith.truncf %208 : vector<16x64xf32> to vector<16x64xbf16>
    %c0_98 = arith.constant 0 : index
    %c0_99 = arith.constant 0 : index
    %c0_100 = arith.constant 0 : index
    %210 = vector.load %arg14[%c0_98, %c0_99, %c0_100] : memref<1x64x32xbf16, #tpu.memory_space<vmem>>, vector<1x64x32xbf16>
    %211 = vector.shape_cast %210 : vector<1x64x32xbf16> to vector<64x32xbf16>
    %cst_101 = arith.constant dense<0.000000e+00> : vector<16x32xf32>
    %212 = tpu.matmul %209, %211, %cst_101 {dimension_numbers = #tpu.dot_dimension_numbers<[1], [0], [0], [1], [0, 0, 1, 1], [], []>} : vector<16x64xbf16>, vector<64x32xbf16>, vector<16x32xf32> -> vector<16x32xf32>
    %c0_102 = arith.constant 0 : index
    %c0_103 = arith.constant 0 : index
    %c0_104 = arith.constant 0 : index
    %213 = vector.load %arg15[%c0_102, %c0_103, %c0_104] : memref<1x1x32xf32, #tpu.memory_space<vmem>>, vector<1x1x32xf32>
    %214 = vector.shape_cast %213 : vector<1x1x32xf32> to vector<1x32xf32>
    %215 = vector.broadcast %214 : vector<1x32xf32> to vector<16x32xf32>
    %216 = arith.addf %212, %215 : vector<16x32xf32>
    %217 = arith.addf %161, %216 : vector<16x32xf32>
    %218 = vector.shape_cast %217 : vector<16x32xf32> to vector<2x8x32xf32>
    %c0_105 = arith.constant 0 : index
    %c0_106 = arith.constant 0 : index
    %c0_107 = arith.constant 0 : index
    %219 = vector.load %arg16[%c0_105, %c0_106, %c0_107] : memref<2x8x32xf32, #tpu.memory_space<vmem>>, vector<2x8x32xf32>
    tpu.vector_store %arg16[%c0_105, %c0_106, %c0_107], %218 {strides = array<i32>} : memref<2x8x32xf32, #tpu.memory_space<vmem>>, vector<2x8x32xf32>,
    return
  }
  func.func @transform_0(%arg0: i32, %arg1: i32) -> (i32, i32) {
    %c0_i32 = arith.constant 0 : i32
    %c0_i32_0 = arith.constant 0 : i32
    %c0_i32_1 = arith.constant 0 : i32
    return %c0_i32, %c0_i32_0 : i32, i32
  }
  func.func @transform_1(%arg0: i32, %arg1: i32) -> (i32, i32, i32) {
    %c0_i32 = arith.constant 0 : i32
    %c0_i32_0 = arith.constant 0 : i32
    %c0_i32_1 = arith.constant 0 : i32
    return %arg0, %c0_i32, %c0_i32_0 : i32, i32, i32
  }
  func.func @transform_2(%arg0: i32, %arg1: i32) -> (i32, i32, i32) {
    %c0_i32 = arith.constant 0 : i32
    %c0_i32_0 = arith.constant 0 : i32
    %c0_i32_1 = arith.constant 0 : i32
    return %arg1, %c0_i32, %c0_i32_0 : i32, i32, i32
  }
  func.func @transform_3(%arg0: i32, %arg1: i32) -> (i32, i32, i32) {
    %c0_i32 = arith.constant 0 : i32
    %c0_i32_0 = arith.constant 0 : i32
    %c0_i32_1 = arith.constant 0 : i32
    return %arg1, %c0_i32, %c0_i32_0 : i32, i32, i32
  }
  func.func @transform_4(%arg0: i32, %arg1: i32) -> (i32, i32, i32) {
    %c0_i32 = arith.constant 0 : i32
    %c0_i32_0 = arith.constant 0 : i32
    %c0_i32_1 = arith.constant 0 : i32
    return %arg1, %c0_i32, %c0_i32_0 : i32, i32, i32
  }
  func.func @transform_5(%arg0: i32, %arg1: i32) -> (i32, i32, i32) {
    %c0_i32 = arith.constant 0 : i32
    %c0_i32_0 = arith.constant 0 : i32
    %c0_i32_1 = arith.constant 0 : i32
    return %arg1, %c0_i32, %c0_i32_0 : i32, i32, i32
  }
  func.func @transform_6(%arg0: i32, %arg1: i32) -> (i32, i32, i32) {
    %c0_i32 = arith.constant 0 : i32
    %c0_i32_0 = arith.constant 0 : i32
    %c0_i32_1 = arith.constant 0 : i32
    return %arg1, %c0_i32, %c0_i32_0 : i32, i32, i32
  }
  func.func @transform_7(%arg0: i32, %arg1: i32) -> (i32, i32, i32) {
    %c0_i32 = arith.constant 0 : i32
    %c0_i32_0 = arith.constant 0 : i32
    %c0_i32_1 = arith.constant 0 : i32
    return %arg1, %c0_i32, %c0_i32_0 : i32, i32, i32
  }
  func.func @transform_8(%arg0: i32, %arg1: i32) -> (i32, i32, i32) {
    %c0_i32 = arith.constant 0 : i32
    %c0_i32_0 = arith.constant 0 : i32
    %c0_i32_1 = arith.constant 0 : i32
    return %arg1, %c0_i32, %c0_i32_0 : i32, i32, i32
  }
  func.func @transform_9(%arg0: i32, %arg1: i32) -> (i32, i32, i32) {
    %c0_i32 = arith.constant 0 : i32
    %c0_i32_0 = arith.constant 0 : i32
    %c0_i32_1 = arith.constant 0 : i32
    return %arg1, %c0_i32, %c0_i32_0 : i32, i32, i32
  }
  func.func @transform_10(%arg0: i32, %arg1: i32) -> (i32, i32, i32) {
    %c0_i32 = arith.constant 0 : i32
    %c0_i32_0 = arith.constant 0 : i32
    %c0_i32_1 = arith.constant 0 : i32
    return %arg1, %c0_i32, %c0_i32_0 : i32, i32, i32
  }
  func.func @transform_11(%arg0: i32, %arg1: i32) -> (i32, i32, i32) {
    %c0_i32 = arith.constant 0 : i32
    %c0_i32_0 = arith.constant 0 : i32
    %c0_i32_1 = arith.constant 0 : i32
    return %arg1, %c0_i32, %c0_i32_0 : i32, i32, i32
  }
  func.func @transform_12(%arg0: i32, %arg1: i32) -> (i32, i32, i32) {
    %c0_i32 = arith.constant 0 : i32
    %c0_i32_0 = arith.constant 0 : i32
    %c0_i32_1 = arith.constant 0 : i32
    return %arg1, %c0_i32, %c0_i32_0 : i32, i32, i32
  }
  func.func @transform_13(%arg0: i32, %arg1: i32) -> (i32, i32, i32) {
    %c0_i32 = arith.constant 0 : i32
    %c0_i32_0 = arith.constant 0 : i32
    %c0_i32_1 = arith.constant 0 : i32
    return %arg1, %c0_i32, %c0_i32_0 : i32, i32, i32
  }
  func.func @transform_14(%arg0: i32, %arg1: i32) -> (i32, i32, i32) {
    %c0_i32 = arith.constant 0 : i32
    %c0_i32_0 = arith.constant 0 : i32
    %c0_i32_1 = arith.constant 0 : i32
    return %arg0, %c0_i32, %c0_i32_0 : i32, i32, i32
  }
}

</mosaic_0001>

<bundles_post_ra>
// kernel: tpu_custom_call.1
= control target key start
LH: loop header
LB: loop body
LE: loop exit
PB: predicated region body
PF: predicated region fallthrough
CT: control target
= control target key end

     0   :  { %s3557_s0 = inlined_call_operand.hbm [shape: bf16[8,8], index: 0, kind: input, shape index: {}]   ;;  %s3558_s1 = inlined_call_operand.hbm [shape: f32[2,8,32], index: 1, kind: input, shape index: {}]   ;;  %s3559_s2 = inlined_call_operand.vmem [shape: f32[2,1,32], index: 2, kind: input, shape index: {}]   ;;  %s3560_s3 = inlined_call_operand.vmem [shape: f32[2,1,32], index: 3, kind: input, shape index: {}]   ;;  %s3561_s4 = inlined_call_operand.vmem [shape: bf16[2,32,96], index: 4, kind: input, shape index: {}]   ;;  %s3562_s5 = inlined_call_operand.vmem [shape: f32[2,1,96], index: 5, kind: input, shape index: {}]   ;;  %s3563_s6 = inlined_call_operand.vmem [shape: bf16[2,32,32], index: 6, kind: input, shape index: {}]   ;;  %s3564_s7 = inlined_call_operand.vmem [shape: f32[2,1,32], index: 7, kind: input, shape index: {}]   ;;  %s3565_s8 = inlined_call_operand.vmem [shape: f32[2,1,32], index: 8, kind: input, shape index: {}]   ;;  %s3566_s9 = inlined_call_operand.vmem [shape: f32[2,1,32], index: 9, kind: input, shape index: {}]   ;;  %s3567_s10 = inlined_call_operand.vmem [shape: bf16[2,32,64], index: 10, kind: input, shape index: {}]   ;;  %s3568_s11 = inlined_call_operand.hbm [shape: f32[2,1,64], index: 11, kind: input, shape index: {}]   ;;  %s3569_s12 = inlined_call_operand.vmem [shape: bf16[2,64,32], index: 12, kind: input, shape index: {}]   ;;  %s3570_s13 = inlined_call_operand.vmem [shape: f32[2,1,32], index: 13, kind: input, shape index: {}]   ;;  %s3571_s14 = inlined_call_operand.hbm [shape: f32[2,8,32], index: 14, kind: output, shape index: {}]  }
   0x1   :  { %3583 = sst [smem:[#allocation22_spill]] %s3557_s0 }
   0x2   :  { %3584 = sst [smem:[#allocation23_spill]] %s3558_s1 }
   0x3   :  { %3585 = sst [smem:[#allocation24_spill]] %s3561_s4 }
   0x4   :  { %3586 = sst [smem:[#allocation25_spill]] %s3563_s6 }
   0x5   :  { %3587 = sst [smem:[#allocation26_spill]] %s3567_s10 }
   0x6   :  { %3588 = sst [smem:[#allocation27_spill]] %s3568_s11 }
   0x7   :  { %3589 = sst [smem:[#allocation28_spill]] %s3569_s12 }
   0x8   :  { %3590 = sst [smem:[#allocation29_spill]] %s3570_s13 }
   0x9   :  { %3591 = sst [smem:[#allocation30_spill]] %s3571_s14 }
   0xa   :  { %19 = vsyncpa [#allocation5], 0 }
   0xb   :  { %20 = vsyncpa [#allocation8], 0 }
   0xc   :  { %21 = vsyncpa [#allocation6], 0  ;;  %s2985_s29 = smov 0   ;;  %s2987_s30 = smov 0  }
   0xd   :  { %s2989_s15 = smov 0   ;;  %s2991_s16 = smov 0  }
   0xe   :  { %s2993_s17 = smov 0   ;;  %s2995_s18 = smov 0  }
   0xf LB: > { %3592 = sst [smem:[#allocation15_spill]] %s2875_s30  ;;  %s3014_s19 = sadd.s32 4294967295, %s2891_s18   ;;  %s2891_s18 = sphi %s2995_s18, %s27_s18   ;;  %s2887_s17 = sphi %s2993_s17, %s3629_s17   ;;  %s2883_s16 = sphi %s2991_s16, %s3628_s16   ;;  %s2879_s15 = sphi %s2989_s15, %s3627_s15   ;;  %s2875_s30 = sphi %s2987_s30, %s3626_s30   ;;  %s2871_s29 = sphi %s2985_s29, %s3625_s29  }
  0x10   : > { %3593 = sst [smem:[#allocation16_spill]] %s2879_s15  ;;  %p340_p0 = scmp.ne.s32.totalorder %s2875_s30, %s2871_s29 }
  0x11   : > { %3594 = sst [smem:[#allocation17_spill]] %s2887_s17  ;;  %p3573_p1 = scmp.eq.s32.totalorder %s3014_s19, 0 }
  0x12   : > { %3595 = sst [smem:[#allocation18_spill]] %s2891_s18  ;;  %p2308_p2 = scmp.ge.s32.totalorder %s2891_s18, 1 }
  0x13   : > { %3596 = sst [smem:[#allocation19_spill]] %s3014_s19  ;;  %p429_p3 = scmp.lt.s32.totalorder %s2891_s18, 3 }
  0x14   : > { %p3022_p4 = por %p3573_p1, %p340_p0  ;;  %s2893_s22 = smov [#allocation4]  }
  0x15   : > { %p3026_p5 = pnand %p2308_p2, %p429_p3  ;;  %s442_s23 = sshll.u32 %s2893_s22, 4  ;;  %s443_s23 = int_to_ptr.vmem [resolvable:$true] %s442_s23 }
  0x16   : > { %s3597_s20 = scalar_select %p3022_p4, 1, 0 }
  0x17   : > { %s3598_s21 = scalar_select %p3026_p5, 1, 0 }
  0x18   : > { %p2578_p6 = pneg %p3026_p5  ;;  %s2894_s24 = smov [#allocation7]  }
  0x19   : > { %s455_s25 = sshll.u32 %s2894_s24, 4  ;;  %s3600_s0 = sld [smem:[#allocation22_spill]]  ;;  %s3038_s25 = int_to_ptr.vmem [resolvable:$true] %s455_s25 }
  0x1a   : > { %p3034_p7 = pnand %p2578_p6, %p3573_p1 }
  0x1c   : > { %p2719_p9 = pneg %p3034_p7 }
  0x1f   : > { %s2717_s29 = scalar_lea.hbm %s3600_s0, 64 }
  0x20   : > { %p2718_p8 = scmp.ne.s32.totalorder %s3600_s0, %s2717_s29  ;;  %p2724_p12 = scmp.lt.u32.totalorder %s2717_s29, %s3600_s0 }
  0x22   : > { %p2720_p10 = pnand %p2719_p9, %p2718_p8 }
  0x24   : > { %p2721_p11 = pneg %p2720_p10 }
  0x26   : > { %p2726_p13 = pnand %p2724_p12, %p2721_p11 }
  0x28   : > { %2729 = shalt.err (!%p2726_p13)
}
  0x29   : > { %s2730_s13 = scalar_lea.vmem %s443_s23, 64  ;;  %p2738_p6 = scmp.lt.s32.totalorder %s443_s23, %s443_s23 }
  0x2a   : > { %p2731_p0 = scmp.ne.s32.totalorder %s443_s23, %s2730_s13  ;;  %p2739_p1 = scmp.lt.s32.totalorder %s2730_s13, %s2730_s13 }
  0x2c   : > { %p2733_p2 = pnand %p2731_p0, %p2719_p9  ;;  %p2740_p4 = por %p2739_p1, %p2738_p6 }
  0x2e   : > { %p2734_p3 = pneg %p2733_p2 }
  0x30   : > { %p2741_p5 = pnand %p2740_p4, %p2734_p3 }
  0x32   : > { %2744 = shalt.err (!%p2741_p5)
}
  0x33   : > { %2581 = dma.hbm_to_vmem [thread:$0]  (!%p3034_p7), %s3600_s0, 64, %s443_s23, [#allocation5]  }
  0x34   : > { %s3601_s1 = sld [smem:[#allocation23_spill]] }
  0x3a   : > { %s2745_s29 = scalar_lea.hbm %s3601_s1, 256 }
  0x3b   : > { %p2746_p8 = scmp.ne.s32.totalorder %s3601_s1, %s2745_s29  ;;  %p2752_p5 = scmp.lt.u32.totalorder %s2745_s29, %s3601_s1 }
  0x3d   : > { %p2748_p1 = pnand %p2746_p8, %p2719_p9 }
  0x3f   : > { %p2749_p4 = pneg %p2748_p1 }
  0x41   : > { %p2754_p10 = pnand %p2752_p5, %p2749_p4 }
  0x43   : > { %2757 = shalt.err (!%p2754_p10)
}
  0x44   : > { %s2758_s23 = scalar_lea.vmem %s3038_s25, 256  ;;  %p2766_p0 = scmp.lt.s32.totalorder %s3038_s25, %s3038_s25 }
  0x45   : > { %p2759_p11 = scmp.ne.s32.totalorder %s3038_s25, %s2758_s23  ;;  %p2767_p2 = scmp.lt.s32.totalorder %s2758_s23, %s2758_s23 }
  0x47   : > { %p2761_p12 = pnand %p2759_p11, %p2719_p9  ;;  %p2768_p3 = por %p2767_p2, %p2766_p0 }
  0x49   : > { %p2762_p13 = pneg %p2761_p12 }
  0x4b   : > { %p2769_p6 = pnand %p2768_p3, %p2762_p13 }
  0x4d   : > { %2772 = shalt.err (!%p2769_p6)
}
  0x4e   : > { %s2895_s10 = smov 128   ;;  %s2896_s14 = smov 8  }
  0x4f   : > { %2584 = dma.hbm_to_vmem [thread:$0]  (!%p3034_p7), %s3601_s1, 256, %s3038_s25, [#allocation8], %s2895_s10, %s2895_s10, %s2896_s14  }
  0x50   : > { %s36_s28 = sadd.s32 1, %s2887_s17  ;;  %s327_s29 = sadd.s32 1, %s2879_s15 }
  0x51   : > { %p37_p9 = scmp.ge.s32.totalorder %s36_s28, 2  ;;  %p334_p8 = scmp.ne.s32.totalorder %s2879_s15, %s2875_s30 }
  0x52   : > { %p335_p1 = scmp.eq.s32.totalorder %s2891_s18, 0  ;;  %p2591_p4 = scmp.lt.s32.totalorder %s2891_s18, 2 }
  0x53   : > { %s3631_s28 = smov (%p37_p9, %s36_s28), 0  ;;  %s529_s22 = sand.u32 1, %s2891_s18  }
  0x54   : > { %3602 = sst [smem:[#allocation20_spill]] %s3631_s28  ;;  %p336_p5 = por %p335_p1, %p334_p8 }
  0x55   : > { %s324_s24 = ssub.s32 %s2887_s17, %s3631_s28  ;;  %s531_s13 = sand.u32 1, %s2879_s15  }
  0x56   : > { %p325_p10 = scmp.eq.s32.totalorder %s324_s24, 0  ;;  %s2312_s26 = sshll.u32 %s2887_s17, 4 }
  0x57   : > { %s3604_s11 = sld [smem:[#allocation27_spill]]  ;;  %s532_s14 = scalar_lea.vmem [#allocation9], %s531_s13 }
  0x58   : > { %s3101_s23 = scalar_select %p325_p10, %s2879_s15, %s327_s29  }
  0x59   : > { %s539_s12 = sshll.u32 %s532_s14, 4  ;;  %p3112_p7 = pnand %p2591_p4, %p336_p5  ;;  %s3108_s12 = int_to_ptr.vmem [resolvable:$true] %s539_s12 }
  0x5a   : > { %3603 = sst [smem:[#allocation21_spill]] %s3101_s23  ;;  %s530_s29 = scalar_lea.sflag [#allocation5], %s529_s22 }
  0x5b   : > { %p2775_p12 = pneg %p3112_p7 }
  0x5d   : > { %s3106_s10 = scalar_lea.hbm %s3604_s11, %s2312_s26  ;;  %s2778_s27 = scalar_lea.hbm %s3604_s11, 32 }
  0x5e   : > { %s2773_s0 = scalar_lea.hbm %s3106_s10, 16  ;;  %p2779_p2 = scmp.lt.u32.totalorder %s3106_s10, %s3604_s11 }
  0x5f   : > { %p2774_p11 = scmp.ne.s32.totalorder %s3106_s10, %s2773_s0  ;;  %p2780_p3 = scmp.lt.u32.totalorder %s2778_s27, %s2773_s0 }
  0x60   : > { %p2782_p9 = scmp.lt.u32.totalorder %s2773_s0, %s3106_s10 }
  0x61   : > { %p2776_p13 = pnand %p2775_p12, %p2774_p11  ;;  %p2781_p6 = por %p2780_p3, %p2779_p2 }
  0x63   : > { %p2777_p0 = pneg %p2776_p13  ;;  %p2783_p8 = por %p2782_p9, %p2781_p6 }
  0x65   : > { %p2784_p1 = pnand %p2783_p8, %p2777_p0 }
  0x67   : > { %2787 = shalt.err (!%p2784_p1)
}
  0x68   : > { %s2788_s22 = scalar_lea.vmem %s3108_s12, 16  ;;  %s2897_s13 = smov [#allocation9]  }
  0x69   : > { %p2789_p4 = scmp.ne.s32.totalorder %s3108_s12, %s2788_s22  ;;  %s2793_s26 = sshll.u32 %s2897_s13, 4  ;;  %s2794_s26 = int_to_ptr.vmem [resolvable:$false] %s2793_s26 }
  0x6a   : > { %s2795_s25 = scalar_lea.vmem %s2794_s26, 32  ;;  %p2796_p11 = scmp.lt.s32.totalorder %s3108_s12, %s2794_s26 }
  0x6b   : > { %p2791_p5 = pnand %p2789_p4, %p2775_p12  ;;  %p2797_p13 = scmp.lt.s32.totalorder %s2795_s25, %s2788_s22 }
  0x6d   : > { %p2792_p10 = pneg %p2791_p5  ;;  %p2798_p2 = por %p2797_p13, %p2796_p11 }
  0x6f   : > { %p2799_p3 = pnand %p2798_p2, %p2792_p10 }
  0x71   : > { %2802 = shalt.err (!%p2799_p3)
}
  0x72   : > { %2588 = dma.hbm_to_vmem [thread:$0]  (!%p3112_p7), %s3106_s10, 16, %s3108_s12, %s530_s29  }
  0x73   : > { %p3606_p0 = scmp.ne.s32.totalorder %s3598_s21, 0 }
  0x74   : > { %p3607_p12 = scmp.eq.s32.totalorder (!%p3606_p0), %s3014_s19, 0 }
  0x75   : > { %562 = sbr.rel (%p3606_p0) target bundleno = 4042 (0xfca), region = 76 }
  0x7c   : > { %2854 = dma.done.wait (%p3607_p12), [#allocation5], 64   ;;  %p3608_p6 = pmov %p3607_p12 }
  0x7e   : > { %2856 = vsyncadd (%p3608_p6), [#allocation5], 4294967232  ;;  %p3609_p9 = pmov %p3608_p6 }
  0x7f   : > { %p3610_p8 = pmov %p3608_p6 }
  0x80   : > { %2858 = dma.done.wait (%p3609_p9), [#allocation8], 256  }
  0x81   : > { %2860 = vsyncadd (%p3610_p8), [#allocation8], 4294967040  ;;  %s572_s0 = sand.u32 1, %s3014_s19   ;;  %s574_s10 = sand.u32 1, %s2875_s30  }
  0x82   : > { %s573_s12 = scalar_lea.sflag [#allocation5], %s572_s0  ;;  %s3153_s21 = scalar_lea.vmem [#allocation9], %s574_s10 }
  0x83   : > { %p3611_p7 = scmp.ne.s32.totalorder %s3597_s20, 0 }
  0x85   : > { %2862 = dma.done.wait (%p3611_p7), %s573_s12, 16  }
  0x86   : > { %2864 = vsyncadd (%p3611_p7), %s573_s12, 4294967280  ;;  %p656_p1 = scmp.lt.s32.totalorder %s2883_s16, 1  ;;  %s3612_s4 = sld [smem:[#allocation24_spill]] }
  0x87   : > { %s3613_s6 = sld [smem:[#allocation25_spill]]  ;;  %s3615_s30 = sld [smem:[#allocation29_spill]] }
  0x88   : > { %s3161_s24 = scalar_select %p656_p1, %s2883_s16, 1 }
  0x89   : > { %s3616_s20 = sld [smem:[#allocation28_spill]]  ;;  %p2324_p4 = scmp.ne.s32.totalorder %s2883_s16, 0 }
  0x8a   : > { %s2378_s26 = sshll.u32 %s3161_s24, 4  ;;  %s680_s23 = scalar_lea.vmem %s3565_s8, %s3161_s24  ;;  %v703_v0 = vld [vmem:[#allocation7] sm:$0xff] (!%p2324_p4)  ;;  %vm705_vm0 = vcmask (!%p2324_p4), 261120   ;;  %v704_v1 = vld [vmem:[#allocation7 + $0x8] sm:$0xff] (!%p2324_p4) }
  0x8b   : > { %s683_s10 = scalar_lea.vmem %s3566_s9, %s3161_s24  ;;  %s2381_s1 = sshll.u32 %s3161_s24, 5  ;;  %706 = vst.msk [vmem:[#allocation10] sm:$0xff] (!%p2324_p4), %vm705_vm0, %v703_v0  ;;  %707 = vst.msk [vmem:[#allocation10 + $0x8] sm:$0xff] (!%p2324_p4), %vm705_vm0, %v704_v1 }
  0x8c   : > { %s3179_s27 = scalar_lea.vmem %s3612_s4, %s2378_s26  ;;  %s3614_s4 = sld [smem:[#allocation26_spill]] }
  0x8d   : > { %s3184_s28 = scalar_lea.vmem %s3613_s6, %s2378_s26  ;;  %s696_s18 = scalar_lea.vmem %s3615_s30, %s3161_s24 }
  0x8e   : > { %702 = sbr.rel (%p2324_p4) target bundleno = 149 (0x95), region = 92 }
  0x8f   : > { %s3211_s19 = scalar_lea.vmem %s3616_s20, %s2381_s1 }
  0x92   : > { %s3201_s15 = scalar_lea.vmem %s3614_s4, %s2378_s26 }
  0x95 PF: > { %v3214_v2 = vld [vmem:[#allocation10] sm:$0xff]  ;;  %vm712_vm1 = vcmask 261120   ;;  %v3216_v3 = vld [vmem:[#allocation10 + $0x8] sm:$0xff]  ;;  %v2898_v11 = vmov 0.0   ;;  %vm2899_vm2 = vmmov 0   ;;  %v2661_v12 = vld [vmem:[%s3179_s27 + $0x8] sm:$0xff]   ;;  %s3617_s30 = scalar_lea.vmem %s3559_s2, %s3161_s24  ;;  %s3618_s26 = scalar_lea.vmem %s3560_s3, %s3161_s24 }
  0x96   : > { %v713_v4 = vsel %vm712_vm1, %v3214_v2, 0.0  ;;  %v719_v5 = vmul.f32 %v3214_v2, %v3214_v2  ;;  %v716_v6 = vsel %vm712_vm1, %v3216_v3, 0.0  ;;  %v720_v7 = vmul.f32 %v3216_v3, %v3216_v3  ;;  %v2660_v10 = vld [vmem:[%s3179_s27] sm:$0xff]   ;;  %2432 = vmatprep.subr.bf16.mxu0 %v2898_v11  ;;  %2436 = vmatprep.mubr.msk.bf16.mxu0 %vm2899_vm2, %v2898_v11  ;;  %s3619_s22 = scalar_lea.vmem %s3562_s5, %s3161_s24  ;;  %s2900_s25 = smov 96  }
  0x97   : > { %714 = vadd.xlane.f32.xlu0 %v713_v4  ;;  %2433 = vmatpush3.bf16.msra.mxu0 %v2660_v10  ;;  %v2325_v30 = vld [vmem:[%s3617_s30] ss:$0 sm:$0xff]  ;;  %vm837_vm3 = vcmask 257024   ;;  %vm872_vm4 = vcmask 64512   ;;  %s2901_s0 = smov 64   ;;  %s2902_s12 = smov 120  }
  0x98   : > { %v721_v8 = vsel %vm712_vm1, %v719_v5, 0.0  ;;  %v724_v9 = vsel %vm712_vm1, %v720_v7, 0.0  ;;  %2440 = vmatprep.subr.bf16.mxu1 %v2898_v11  ;;  %2434 = vmatprep.subr.bf16.mxu0 %v2898_v11  ;;  %v2326_v35 = vld [vmem:[%s3618_s26] ss:$0 sm:$0xff]  ;;  %vm992_vm5 = vcmask 1043456   ;;  %s2903_s29 = smov 112   ;;  %s3620_s6 = scalar_lea.vmem %s3564_s7, %s3161_s24 }
  0x99   : > { %722 = vadd.xlane.f32.xlu1 %v721_v8  ;;  %2442 = vmatprep.mubr.msk.bf16.mxu1 %vm2899_vm2, %v2898_v11  ;;  %v2327_v40 = vld [vmem:[%s3619_s22] ss:$0 sm:$0xff]  ;;  %s2904_s1 = smov 104   ;;  %s2905_s11 = smov 8   ;;  %vm1797_vm6 = vcmask 195584   ;;  %vm1792_vm7 = vcmask 130048  }
  0x9a   : > { %v864_v61 = vld [vmem:[#allocation4] sm:$0xf]  ;;  %s2906_s17 = smov 16   ;;  %s2907_s14 = smov 24   ;;  %vm2056_vm8 = vcmask 523264  }
  0x9b   : > { %717 = vadd.xlane.f32.xlu0 %v716_v6  ;;  %2435 = vmatpush3.bf16.msra.mxu0 %v2661_v12  ;;  %v3275_v62 = vunpack.c.l.bf16 %v864_v61  ;;  %s2908_s26 = smov [#allocation10]  }
  0x9c   : > { %2446 = vmatprep.subr.bf16.mxu0 %v2898_v11  ;;  %s2114_s27 = sshll.u32 %s2908_s26, 4  ;;  %s2115_s27 = int_to_ptr.vmem [resolvable:$true] %s2114_s27 }
  0x9d   : > { %725 = vadd.xlane.f32.xlu1 %v724_v9  ;;  %p2810_p2 = scmp.lt.s32.totalorder %s2115_s27, %s2115_s27 }
 0x124   : > { %v715_v13 = vpop.xlane.xlu0 %714 }
 0x125   : > { %v727_v14 = vmul.f32 0.03125, %v715_v13 }
 0x126   : > { %v723_v15 = vpop.xlane.xlu1 %722 }
 0x127   : > { %v731_v16 = vmul.f32 %v727_v14, %v727_v14  ;;  %v729_v17 = vmul.f32 0.03125, %v723_v15  ;;  %v735_v27 = vsub.f32 %v3214_v2, %v727_v14 }
 0x128   : > { %v718_v18 = vpop.xlane.xlu0 %717 }
 0x129   : > { %v733_v19 = vsub.f32 %v729_v17, %v731_v16  ;;  %v728_v20 = vmul.f32 0.03125, %v718_v18 }
 0x12a   : > { %v726_v21 = vpop.xlane.xlu1 %725 }
 0x12b   : > { %v737_v22 = vadd.f32 1e-06, %v733_v19  ;;  %v732_v23 = vmul.f32 %v728_v20, %v728_v20  ;;  %v730_v24 = vmul.f32 0.03125, %v726_v21  ;;  %v736_v31 = vsub.f32 %v3216_v3, %v728_v20 }
 0x12d   : > { %2673 = vrsqrt.f32 %v737_v22  ;;  %v734_v25 = vsub.f32 %v730_v24, %v732_v23 }
 0x12f   : > { %v738_v26 = vadd.f32 1e-06, %v734_v25 }
 0x131   : > { %2675 = vrsqrt.f32 %v738_v26 }
 0x137   : > { %v2674_v28 = vpop.eup %2673 }
 0x138   : > { %v741_v29 = vmul.f32 %v2674_v28, %v735_v27 }
 0x13a   : > { %v749_v34 = vmul.f32 %v2325_v30, %v741_v29 }
 0x13b   : > { %v2676_v32 = vpop.eup %2675 }
 0x13c   : > { %v742_v33 = vmul.f32 %v2676_v32, %v736_v31  ;;  %v757_v37 = vadd.f32 %v2326_v35, %v749_v34 }
 0x13e   : > { %v750_v36 = vmul.f32 %v2325_v30, %v742_v33 }
 0x140   : > { %v758_v38 = vadd.f32 %v2326_v35, %v750_v36 }
 0x142   : > { %v759_v39 = vpack.c.bf16 %v758_v38, %v757_v37 }
 0x144   : > { %2437 = vmatmul.mubr.msk.bf16.vlgmr.msra.gmra.mrb[0].mxu0 %vm712_vm1, %v759_v39 }
 0x145   : > { %2448 = vmatprep.mubr.msk.bf16.mxu0 %vm2899_vm2, %v2898_v11 }
 0x217   : > { %v820_v41 = vpop.f32.mrb[0].mxu0 }
 0x218   : > { %v821_v42 = vadd.f32 %v2327_v40, %v820_v41  ;;  %v2438_v43 = vpop.f32.mrb[1].mxu0 }
 0x219   : > { %v823_v44 = vpop.f32.mrb[2].mxu0 }
 0x21a   : > { %v827_v45 = vmul.f32 0.35355338, %v821_v42  ;;  %v3258_v46 = vpack.c.bf16 %v821_v42, %v821_v42  ;;  %v824_v47 = vadd.f32 %v2327_v40, %v823_v44  ;;  %v2439_v48 = vpop.f32.mrb[3].mxu0 }
 0x21c   : > { %v2382_v49 = vpack.c.bf16 %v827_v45, %v827_v45  ;;  %v828_v50 = vmul.f32 0.35355338, %v824_v47  ;;  %v2385_v51 = vpack.c.bf16 %v824_v47, %v824_v47  ;;  %846 = vrot.lane.b32.xlu0 %v3258_v46, %s2900_s25 }
 0x21e   : > { %838 = vst.msk [vmem:[#allocation2] sm:$0xf] %vm837_vm3, %v2382_v49  ;;  %v2383_v52 = vpack.c.bf16 %v828_v50, %v828_v50  ;;  %848 = vrot.lane.b32.xlu1 %v2385_v51, %s2900_s25 }
 0x220   : > { %839 = vst.msk [vmem:[#allocation2 + $0x4] sm:$0xf] %vm837_vm3, %v2383_v52 }
 0x225   : > { %v866_v59 = vld [vmem:[#allocation2] sm:$0xf] }
 0x226   : > { %v3302_v30 = vcombine.low %v866_v59, %v866_v59 }
 0x227   : > { %v867_v60 = vld [vmem:[#allocation2 + $0x4] sm:$0xf] }
 0x228   : > { %v3297_v29 = vcombine.low %v867_v60, %v867_v60 }
 0x28e   : > { %v847_v53 = vpop.permute.xlu0 %846 }
 0x28f   : > { %853 = vst.msk [vmem:[#allocation2 + $0x8] sm:$0xf] %vm837_vm3, %v847_v53 }
 0x290   : > { %v849_v54 = vpop.permute.xlu1 %848 }
 0x291   : > { %854 = vst.msk [vmem:[#allocation2 + $0xc] sm:$0xf] %vm837_vm3, %v849_v54 }
 0x296   : > { %v868_v55 = vld [vmem:[#allocation2 + $0x8] sm:$0xf] }
 0x297   : > { %v877_v56 = vsel %vm872_vm4, %v868_v55, 0  ;;  %v3281_v14 = vcombine.low %v868_v55, %v868_v55 }
 0x298   : > { %2441 = vmatpush3.bf16.xpose.msra.mxu1 %v877_v56  ;;  %v869_v57 = vld [vmem:[#allocation2 + $0xc] sm:$0xf] }
 0x299   : > { %v923_v58 = vsel %vm872_vm4, %v869_v57, 0  ;;  %2452 = vmatprep.subr.bf16.mxu1 %v2898_v11  ;;  %v3293_v28 = vcombine.low %v869_v57, %v869_v57 }
 0x29a   : > { %2447 = vmatpush3.bf16.xpose.msra.mxu0 %v923_v58 }
 0x29b   : > { %2458 = vmatprep.subr.bf16.mxu0 %v2898_v11 }
 0x29f   : > { %2443 = vmatmul.mubr.msk.bf16.vlgmr.msra.gmra.mrb[0].mxu1 %vm872_vm4, %v866_v59 }
 0x2a0   : > { %2454 = vmatprep.mubr.msk.bf16.mxu1 %vm2899_vm2, %v2898_v11 }
 0x2a1   : > { %2449 = vmatmul.mubr.msk.bf16.vlgmr.msra.gmra.mrb[4].mxu0 %vm872_vm4, %v867_v60 }
 0x2a2   : > { %2460 = vmatprep.mubr.msk.bf16.mxu0 %vm2899_vm2, %v2898_v11 }
 0x372   : > { %v913_v63 = vpop.f32.mrb[0].mxu1 }
 0x373   : > { %v914_v0 = vadd.f32 %v913_v63, %v3275_v62  ;;  %v2444_v1 = vpop.f32.mrb[1].mxu1 }
 0x374   : > { %v916_v4 = vpop.f32.mrb[2].mxu1  ;;  %v959_v5 = vpop.f32.mrb[4].mxu0 }
 0x375   : > { %v960_v6 = vadd.f32 %v959_v5, %v3275_v62  ;;  %v2445_v7 = vpop.f32.mrb[3].mxu1  ;;  %v2450_v8 = vpop.f32.mrb[5].mxu0  ;;  %v965_v9 = vsel %vm872_vm4, %v914_v0, -inf }
 0x376   : > { %966 = vmax.xlane.f32.xlu1 %v965_v9  ;;  %v962_v10 = vpop.f32.mrb[6].mxu0 }
 0x377   : > { %v2451_v12 = vpop.f32.mrb[7].mxu0  ;;  %v968_v13 = vsel %vm872_vm4, %v960_v6, -inf }
 0x378   : > { %969 = vmax.xlane.f32.xlu0 %v968_v13 }
 0x387   : > { %857 = vrot.lane.b32.xlu1 %v2385_v51, %s2901_s0 }
 0x38b   : > { %1092 = vrot.lane.b32.xlu1 %v3281_v14, %s2902_s12 }
 0x403   : > { %v967_v15 = vpop.xlane.xlu1 %966 }
 0x404   : > { %v971_v16 = vsub.f32 %v914_v0, %v967_v15 }
 0x405   : > { %v970_v17 = vpop.xlane.xlu0 %969 }
 0x406   : > { %v973_v18 = vmul.f32 1.442695, %v971_v16  ;;  %v972_v19 = vsub.f32 %v960_v6, %v970_v17 }
 0x407   : > { %v858_v20 = vpop.permute.xlu1 %857 }
 0x408   : > { %2677 = vpow2.f32 %v973_v18  ;;  %v975_v21 = vmul.f32 1.442695, %v972_v19  ;;  %863 = vst.msk [vmem:[#allocation2 + $0x14] sm:$0xf] %vm837_vm3, %v858_v20 }
 0x40a   : > { %2679 = vpow2.f32 %v975_v21 }
 0x40b   : > { %v1093_v31 = vpop.permute.xlu1 %1092 }
 0x40c   : > { %v1098_v45 = vsel %vm872_vm4, %v1093_v31, 0 }
 0x40f   : > { %v3286_v22 = vld [vmem:[#allocation2 + $0x14] sm:$0xf] }
 0x410   : > { %v1040_v23 = vsel %vm992_vm5, %v3286_v22, 0  ;;  %v3338_v7 = vcombine.low %v3286_v22, %v3286_v22 }
 0x411   : > { %2459 = vmatpush3.bf16.msra.mxu0 %v1040_v23 }
 0x412   : > { %v2678_v24 = vpop.eup %2677  ;;  %2470 = vmatprep.subr.bf16.mxu0 %v2898_v11 }
 0x413   : > { %v977_v25 = vsel %vm872_vm4, %v2678_v24, 0.0 }
 0x414   : > { %v2680_v26 = vpop.eup %2679  ;;  %978 = vadd.xlane.f32.xlu0 %v977_v25 }
 0x415   : > { %v980_v27 = vsel %vm872_vm4, %v2680_v26, 0.0 }
 0x416   : > { %981 = vadd.xlane.f32.xlu1 %v980_v27 }
 0x427   : > { %1148 = vrot.lane.b32.xlu1 %v3293_v28, %s2902_s12 }
 0x42a   : > { %855 = vrot.lane.b32.xlu0 %v3258_v46, %s2901_s0 }
 0x42b   : > { %1143 = vrot.lane.b32.xlu1 %v3297_v29, %s2902_s12 }
 0x42e   : > { %1087 = vrot.lane.b32.xlu0 %v3302_v30, %s2902_s12 }
 0x4a1   : > { %v979_v32 = vpop.xlane.xlu0 %978 }
 0x4a2   : > { %2681 = vrcp.f32 %v979_v32 }
 0x4a3   : > { %v982_v33 = vpop.xlane.xlu1 %981 }
 0x4a4   : > { %2683 = vrcp.f32 %v982_v33 }
 0x4a5   : > { %v856_v34 = vpop.permute.xlu0 %855 }
 0x4a6   : > { %862 = vst.msk [vmem:[#allocation2 + $0x10] sm:$0xf] %vm837_vm3, %v856_v34 }
 0x4a7   : > { %v1149_v42 = vpop.permute.xlu1 %1148 }
 0x4a8   : > { %v1154_v44 = vsel %vm872_vm4, %v1149_v42, 0 }
 0x4a9   : > { %v1088_v47 = vpop.permute.xlu0 %1087 }
 0x4ab   : > { %v1144_v46 = vpop.permute.xlu1 %1143 }
 0x4ac   : > { %v2682_v35 = vpop.eup %2681 }
 0x4ad   : > { %v985_v36 = vmul.f32 %v2682_v35, %v2678_v24  ;;  %v3307_v37 = vld [vmem:[#allocation2 + $0x10] sm:$0xf] }
 0x4ae   : > { %v2684_v38 = vpop.eup %2683  ;;  %v994_v39 = vsel %vm992_vm5, %v3307_v37, 0  ;;  %v3354_v22 = vcombine.low %v3307_v37, %v3307_v37 }
 0x4af   : > { %v986_v40 = vmul.f32 %v2684_v38, %v2680_v26  ;;  %2453 = vmatpush3.bf16.msra.mxu1 %v994_v39  ;;  %v987_v41 = vpack.c.bf16 %v985_v36, %v985_v36 }
 0x4b0   : > { %2464 = vmatprep.subr.bf16.mxu1 %v2898_v11 }
 0x4b1   : > { %v988_v43 = vpack.c.bf16 %v986_v40, %v986_v40 }
 0x4b2   : > { %2455 = vmatmul.mubr.msk.bf16.vlgmr.msra.gmra.mrb[4].mxu1 %vm872_vm4, %v987_v41 }
 0x4b3   : > { %2461 = vmatmul.mubr.msk.bf16.vlgmr.msra.gmra.mrb[8].mxu0 %vm872_vm4, %v988_v43  ;;  %2466 = vmatprep.mubr.msk.bf16.mxu1 %vm2899_vm2, %v2898_v11 }
 0x4b4   : > { %2471 = vmatpush3.bf16.xpose.msra.mxu0 %v1154_v44  ;;  %2472 = vmatprep.mubr.msk.bf16.mxu0 %vm2899_vm2, %v2898_v11 }
 0x4b5   : > { %2482 = vmatprep.subr.bf16.mxu0 %v2898_v11 }
 0x4b8   : > { %2465 = vmatpush3.bf16.xpose.msra.mxu1 %v1098_v45 }
 0x4b9   : > { %2476 = vmatprep.subr.bf16.mxu1 %v2898_v11 }
 0x4bb   : > { %2473 = vmatmul.mubr.msk.bf16.vlgmr.msra.gmra.mrb[12].mxu0 %vm872_vm4, %v1144_v46 }
 0x4bc   : > { %2484 = vmatprep.mubr.msk.bf16.mxu0 %vm2899_vm2, %v2898_v11 }
 0x4bf   : > { %2467 = vmatmul.mubr.msk.bf16.vlgmr.msra.gmra.mrb[8].mxu1 %vm872_vm4, %v1088_v47 }
 0x4c0   : > { %2478 = vmatprep.mubr.msk.bf16.mxu1 %vm2899_vm2, %v2898_v11 }
 0x585   : > { %v3328_v48 = vpop.f32.mrb[4].mxu1 }
 0x586   : > { %v2456_v49 = vpop.f32.mrb[5].mxu1  ;;  %v3330_v50 = vpop.f32.mrb[8].mxu0 }
 0x587   : > { %v1033_v51 = vpop.f32.mrb[6].mxu1  ;;  %v2462_v52 = vpop.f32.mrb[9].mxu0 }
 0x588   : > { %v2457_v53 = vpop.f32.mrb[7].mxu1  ;;  %v1079_v54 = vpop.f32.mrb[10].mxu0 }
 0x589   : > { %v2463_v55 = vpop.f32.mrb[11].mxu0 }
 0x58e   : > { %v1190_v56 = vpop.f32.mrb[12].mxu0 }
 0x58f   : > { %v1191_v57 = vadd.f32 %v1190_v56, %v3275_v62  ;;  %v2474_v58 = vpop.f32.mrb[13].mxu0 }
 0x590   : > { %v1193_v59 = vpop.f32.mrb[14].mxu0 }
 0x591   : > { %v2475_v60 = vpop.f32.mrb[15].mxu0  ;;  %v1199_v61 = vsel %vm872_vm4, %v1191_v57, -inf }
 0x592   : > { %v1134_v63 = vpop.f32.mrb[8].mxu1  ;;  %1200 = vmax.xlane.f32.xlu1 %v1199_v61 }
 0x593   : > { %v1135_v0 = vadd.f32 %v1134_v63, %v3275_v62  ;;  %v2468_v1 = vpop.f32.mrb[9].mxu1 }
 0x594   : > { %v1137_v4 = vpop.f32.mrb[10].mxu1 }
 0x595   : > { %v2469_v5 = vpop.f32.mrb[11].mxu1  ;;  %v1196_v6 = vsel %vm872_vm4, %v1135_v0, -inf }
 0x596   : > { %1197 = vmax.xlane.f32.xlu0 %v1196_v6 }
 0x5a3   : > { %1274 = vrot.lane.b32.xlu1 %v3338_v7, %s2902_s12 }
 0x5a7   : > { %1326 = vrot.lane.b32.xlu1 %v3281_v14, %s2903_s29 }
 0x5ab   : > { %1376 = vrot.lane.b32.xlu1 %v3293_v28, %s2903_s29 }
 0x5af   : > { %1374 = vrot.lane.b32.xlu1 %v3297_v29, %s2903_s29 }
 0x61f   : > { %v1201_v8 = vpop.xlane.xlu1 %1200 }
 0x620   : > { %v1203_v9 = vsub.f32 %v1191_v57, %v1201_v8 }
 0x622   : > { %v1206_v16 = vmul.f32 1.442695, %v1203_v9 }
 0x623   : > { %v1198_v10 = vpop.xlane.xlu0 %1197  ;;  %v1275_v12 = vpop.permute.xlu1 %1274 }
 0x624   : > { %v1202_v13 = vsub.f32 %v1135_v0, %v1198_v10  ;;  %v1280_v15 = vsel %vm992_vm5, %v1275_v12, 0 }
 0x625   : > { %2483 = vmatpush3.bf16.msra.mxu0 %v1280_v15 }
 0x626   : > { %v1204_v17 = vmul.f32 1.442695, %v1202_v13  ;;  %2494 = vmatprep.subr.bf16.mxu0 %v2898_v11 }
 0x627   : > { %v1327_v31 = vpop.permute.xlu1 %1326 }
 0x628   : > { %2685 = vpow2.f32 %v1204_v17  ;;  %v1332_v37 = vsel %vm872_vm4, %v1327_v31, 0 }
 0x629   : > { %2687 = vpow2.f32 %v1206_v16 }
 0x62b   : > { %v1377_v36 = vpop.permute.xlu1 %1376 }
 0x62c   : > { %v1382_v39 = vsel %vm872_vm4, %v1377_v36, 0 }
 0x62f   : > { %v1375_v41 = vpop.permute.xlu1 %1374 }
 0x632   : > { %v2686_v18 = vpop.eup %2685 }
 0x633   : > { %v1208_v19 = vsel %vm872_vm4, %v2686_v18, 0.0  ;;  %v2688_v20 = vpop.eup %2687 }
 0x634   : > { %1209 = vadd.xlane.f32.xlu0 %v1208_v19  ;;  %v1211_v21 = vsel %vm872_vm4, %v2688_v20, 0.0 }
 0x638   : > { %1212 = vadd.xlane.f32.xlu0 %v1211_v21 }
 0x64e   : > { %1223 = vrot.lane.b32.xlu0 %v3354_v22, %s2902_s12 }
 0x652   : > { %1324 = vrot.lane.b32.xlu0 %v3302_v30, %s2903_s29 }
 0x6c1   : > { %v1210_v23 = vpop.xlane.xlu0 %1209 }
 0x6c2   : > { %2689 = vrcp.f32 %v1210_v23 }
 0x6c5   : > { %v1213_v24 = vpop.xlane.xlu0 %1212 }
 0x6c6   : > { %2691 = vrcp.f32 %v1213_v24 }
 0x6c9   : > { %v1224_v25 = vpop.permute.xlu0 %1223 }
 0x6ca   : > { %v1229_v26 = vsel %vm992_vm5, %v1224_v25, 0 }
 0x6cb   : > { %2477 = vmatpush3.bf16.msra.mxu1 %v1229_v26 }
 0x6cc   : > { %v2690_v27 = vpop.eup %2689  ;;  %2488 = vmatprep.subr.bf16.mxu1 %v2898_v11 }
 0x6cd   : > { %v1216_v32 = vmul.f32 %v2690_v27, %v2686_v18  ;;  %v1325_v40 = vpop.permute.xlu0 %1324 }
 0x6cf   : > { %v1218_v33 = vpack.c.bf16 %v1216_v32, %v1216_v32 }
 0x6d0   : > { %v2692_v34 = vpop.eup %2691 }
 0x6d1   : > { %v1217_v35 = vmul.f32 %v2692_v34, %v2688_v20  ;;  %2479 = vmatmul.mubr.msk.bf16.vlgmr.msra.gmra.mrb[12].mxu1 %vm872_vm4, %v1218_v33 }
 0x6d2   : > { %2490 = vmatprep.mubr.msk.bf16.mxu1 %vm2899_vm2, %v2898_v11 }
 0x6d3   : > { %v1219_v38 = vpack.c.bf16 %v1217_v35, %v1217_v35 }
 0x6d4   : > { %2489 = vmatpush3.bf16.xpose.msra.mxu1 %v1332_v37 }
 0x6d5   : > { %2485 = vmatmul.mubr.msk.bf16.vlgmr.msra.gmra.mrb[16].mxu0 %vm872_vm4, %v1219_v38  ;;  %2500 = vmatprep.subr.bf16.mxu1 %v2898_v11 }
 0x6d6   : > { %2495 = vmatpush3.bf16.xpose.msra.mxu0 %v1382_v39  ;;  %2496 = vmatprep.mubr.msk.bf16.mxu0 %vm2899_vm2, %v2898_v11 }
 0x6d7   : > { %2506 = vmatprep.subr.bf16.mxu0 %v2898_v11 }
 0x6db   : > { %2491 = vmatmul.mubr.msk.bf16.vlgmr.msra.gmra.mrb[16].mxu1 %vm872_vm4, %v1325_v40 }
 0x6dc   : > { %2502 = vmatprep.mubr.msk.bf16.mxu1 %vm2899_vm2, %v2898_v11 }
 0x6dd   : > { %2497 = vmatmul.mubr.msk.bf16.vlgmr.msra.gmra.mrb[20].mxu0 %vm872_vm4, %v1375_v41 }
 0x6de   : > { %2508 = vmatprep.mubr.msk.bf16.mxu0 %vm2899_vm2, %v2898_v11 }
 0x7a4   : > { %v3378_v42 = vpop.f32.mrb[12].mxu1 }
 0x7a5   : > { %v2480_v43 = vpop.f32.mrb[13].mxu1 }
 0x7a6   : > { %v1268_v44 = vpop.f32.mrb[14].mxu1 }
 0x7a7   : > { %v2481_v45 = vpop.f32.mrb[15].mxu1 }
 0x7a8   : > { %v3380_v46 = vpop.f32.mrb[16].mxu0 }
 0x7a9   : > { %v2486_v47 = vpop.f32.mrb[17].mxu0 }
 0x7aa   : > { %v1319_v49 = vpop.f32.mrb[18].mxu0 }
 0x7ab   : > { %v2487_v51 = vpop.f32.mrb[19].mxu0 }
 0x7ae   : > { %v1368_v52 = vpop.f32.mrb[16].mxu1 }
 0x7af   : > { %v1369_v53 = vadd.f32 %v1368_v52, %v3275_v62  ;;  %v2492_v54 = vpop.f32.mrb[17].mxu1 }
 0x7b0   : > { %v1371_v55 = vpop.f32.mrb[18].mxu1  ;;  %v1418_v56 = vpop.f32.mrb[20].mxu0 }
 0x7b1   : > { %v1419_v57 = vadd.f32 %v1418_v56, %v3275_v62  ;;  %v2493_v58 = vpop.f32.mrb[19].mxu1  ;;  %v2498_v59 = vpop.f32.mrb[21].mxu0  ;;  %v1424_v60 = vsel %vm872_vm4, %v1369_v53, -inf }
 0x7b2   : > { %1425 = vmax.xlane.f32.xlu0 %v1424_v60  ;;  %v1421_v61 = vpop.f32.mrb[22].mxu0  ;;  %v1322_v58 = vpack.c.bf16 %v3378_v42, %v3378_v42 }
 0x7b3   : > { %v2499_v63 = vpop.f32.mrb[23].mxu0  ;;  %v1427_v0 = vsel %vm872_vm4, %v1419_v57, -inf }
 0x7b4   : > { %1428 = vmax.xlane.f32.xlu1 %v1427_v0 }
 0x7c5   : > { %1496 = vrot.lane.b32.xlu1 %v3338_v7, %s2903_s29 }
 0x7c9   : > { %1548 = vrot.lane.b32.xlu1 %v3281_v14, %s2904_s1 }
 0x7cd   : > { %1598 = vrot.lane.b32.xlu1 %v3293_v28, %s2904_s1 }
 0x7d1   : > { %1596 = vrot.lane.b32.xlu1 %v3297_v29, %s2904_s1 }
 0x83f   : > { %v1426_v1 = vpop.xlane.xlu0 %1425 }
 0x840   : > { %v1430_v4 = vsub.f32 %v1369_v53, %v1426_v1 }
 0x841   : > { %v1429_v5 = vpop.xlane.xlu1 %1428 }
 0x842   : > { %v1432_v6 = vmul.f32 1.442695, %v1430_v4  ;;  %v1431_v8 = vsub.f32 %v1419_v57, %v1429_v5 }
 0x844   : > { %2693 = vpow2.f32 %v1432_v6  ;;  %v1434_v9 = vmul.f32 1.442695, %v1431_v8 }
 0x845   : > { %v1497_v10 = vpop.permute.xlu1 %1496 }
 0x846   : > { %2695 = vpow2.f32 %v1434_v9  ;;  %v1502_v12 = vsel %vm992_vm5, %v1497_v10, 0 }
 0x847   : > { %2507 = vmatpush3.bf16.msra.mxu0 %v1502_v12 }
 0x848   : > { %2518 = vmatprep.subr.bf16.mxu0 %v2898_v11 }
 0x849   : > { %v1549_v20 = vpop.permute.xlu1 %1548 }
 0x84d   : > { %v1599_v26 = vpop.permute.xlu1 %1598 }
 0x84e   : > { %v2694_v14 = vpop.eup %2693  ;;  %v1604_v31 = vsel %vm872_vm4, %v1599_v26, 0 }
 0x84f   : > { %v1436_v28 = vsel %vm872_vm4, %v2694_v14, 0.0 }
 0x850   : > { %v2696_v13 = vpop.eup %2695  ;;  %1437 = vadd.xlane.f32.xlu0 %v1436_v28 }
 0x851   : > { %v1439_v29 = vsel %vm872_vm4, %v2696_v13, 0.0  ;;  %v1597_v33 = vpop.permute.xlu1 %1596 }
 0x854   : > { %1440 = vadd.xlane.f32.xlu0 %v1439_v29 }
 0x86a   : > { %1448 = vrot.lane.b32.xlu0 %v3354_v22, %s2903_s29 }
 0x86e   : > { %1546 = vrot.lane.b32.xlu0 %v3302_v30, %s2904_s1  ;;  %v1554_v30 = vsel %vm872_vm4, %v1549_v20, 0 }
 0x8dd   : > { %v1438_v15 = vpop.xlane.xlu0 %1437 }
 0x8de   : > { %2697 = vrcp.f32 %v1438_v15 }
 0x8e1   : > { %v1441_v16 = vpop.xlane.xlu0 %1440 }
 0x8e2   : > { %2699 = vrcp.f32 %v1441_v16 }
 0x8e5   : > { %v1449_v17 = vpop.permute.xlu0 %1448 }
 0x8e6   : > { %v1454_v18 = vsel %vm992_vm5, %v1449_v17, 0 }
 0x8e7   : > { %2501 = vmatpush3.bf16.msra.mxu1 %v1454_v18  ;;  %v2664_v18 = vld [vmem:[%s3184_s28] sm:$0xff]  }
 0x8e8   : > { %v2698_v19 = vpop.eup %2697  ;;  %2512 = vmatprep.subr.bf16.mxu1 %v2898_v11 }
 0x8e9   : > { %v1444_v21 = vmul.f32 %v2698_v19, %v2694_v14  ;;  %v1547_v32 = vpop.permute.xlu0 %1546  ;;  %v2665_v19 = vld [vmem:[%s3184_s28 + $0x8] sm:$0xff]  }
 0x8eb   : > { %v1446_v23 = vpack.c.bf16 %v1444_v21, %v1444_v21 }
 0x8ec   : > { %v2700_v24 = vpop.eup %2699 }
 0x8ed   : > { %v1445_v25 = vmul.f32 %v2700_v24, %v2696_v13  ;;  %2503 = vmatmul.mubr.msk.bf16.vlgmr.msra.gmra.mrb[20].mxu1 %vm872_vm4, %v1446_v23 }
 0x8ee   : > { %2514 = vmatprep.mubr.msk.bf16.mxu1 %vm2899_vm2, %v2898_v11 }
 0x8ef   : > { %v1447_v27 = vpack.c.bf16 %v1445_v25, %v1445_v25 }
 0x8f0   : > { %2513 = vmatpush3.bf16.xpose.msra.mxu1 %v1554_v30 }
 0x8f1   : > { %2509 = vmatmul.mubr.msk.bf16.vlgmr.msra.gmra.mrb[24].mxu0 %vm872_vm4, %v1447_v27  ;;  %2524 = vmatprep.subr.bf16.mxu1 %v2898_v11 }
 0x8f2   : > { %2519 = vmatpush3.bf16.xpose.msra.mxu0 %v1604_v31  ;;  %2520 = vmatprep.mubr.msk.bf16.mxu0 %vm2899_vm2, %v2898_v11 }
 0x8f3   : > { %2530 = vmatprep.subr.bf16.mxu0 %v2898_v11 }
 0x8f7   : > { %2515 = vmatmul.mubr.msk.bf16.vlgmr.msra.gmra.mrb[24].mxu1 %vm872_vm4, %v1547_v32 }
 0x8f8   : > { %2526 = vmatprep.mubr.msk.bf16.mxu1 %vm2899_vm2, %v2898_v11 }
 0x8f9   : > { %2521 = vmatmul.mubr.msk.bf16.vlgmr.msra.gmra.mrb[28].mxu0 %vm872_vm4, %v1597_v33 }
 0x8fa   : > { %2532 = vmatprep.mubr.msk.bf16.mxu0 %vm2899_vm2, %v2898_v11 }
 0x9c0   : > { %v1490_v34 = vpop.f32.mrb[20].mxu1 }
 0x9c1   : > { %v2504_v35 = vpop.f32.mrb[21].mxu1  ;;  %v1544_v9 = vpack.c.bf16 %v1490_v34, %v1490_v34 }
 0x9c2   : > { %v1493_v36 = vpop.f32.mrb[22].mxu1 }
 0x9c3   : > { %v2505_v37 = vpop.f32.mrb[23].mxu1  ;;  %v1082_v36 = vpack.c.bf16 %v3328_v48, %v3328_v48 }
 0x9c4   : > { %v1538_v38 = vpop.f32.mrb[24].mxu0 }
 0x9c5   : > { %v2510_v39 = vpop.f32.mrb[25].mxu0  ;;  %v1545_v59 = vpack.c.bf16 %v1538_v38, %v1538_v38 }
 0x9c6   : > { %v1541_v40 = vpop.f32.mrb[26].mxu0 }
 0x9c7   : > { %v2511_v41 = vpop.f32.mrb[27].mxu0 }
 0x9c8   : > { %v1083_v41 = vpack.c.bf16 %v3330_v50, %v3330_v50  ;;  %v2357_v50 = vld [vmem:[%s3620_s6] ss:$0 sm:$0xff] }
 0x9ca   : > { %v1590_v43 = vpop.f32.mrb[24].mxu1 }
 0x9cb   : > { %v1591_v44 = vadd.f32 %v1590_v43, %v3275_v62  ;;  %v2516_v45 = vpop.f32.mrb[25].mxu1 }
 0x9cc   : > { %v1593_v47 = vpop.f32.mrb[26].mxu1  ;;  %v1640_v49 = vpop.f32.mrb[28].mxu0 }
 0x9cd   : > { %v1641_v51 = vadd.f32 %v1640_v49, %v3275_v62  ;;  %v2517_v52 = vpop.f32.mrb[27].mxu1  ;;  %v2522_v53 = vpop.f32.mrb[29].mxu0  ;;  %v1646_v54 = vsel %vm872_vm4, %v1591_v44, -inf  ;;  %v1323_v62 = vpack.c.bf16 %v3380_v46, %v3380_v46 }
 0x9ce   : > { %1647 = vmax.xlane.f32.xlu0 %v1646_v54  ;;  %v1643_v55 = vpop.f32.mrb[30].mxu0 }
 0x9cf   : > { %v2523_v56 = vpop.f32.mrb[31].mxu0  ;;  %v1649_v57 = vsel %vm872_vm4, %v1641_v51, -inf }
 0x9d0   : > { %1650 = vmax.xlane.f32.xlu1 %v1649_v57 }
 0x9e1   : > { %1718 = vrot.lane.b32.xlu1 %v3338_v7, %s2904_s1 }
 0x9e5   : > { %1770 = vrot.lane.b32.xlu1 %v1322_v58, %s2905_s11 }
 0x9e9   : > { %1772 = vrot.lane.b32.xlu1 %v1323_v62, %s2905_s11 }
 0x9ed   : > { %1778 = vrot.lane.b32.xlu1 %v1545_v59, %s2906_s17 }
 0xa5b   : > { %v1648_v60 = vpop.xlane.xlu0 %1647 }
 0xa5c   : > { %v1652_v61 = vsub.f32 %v1591_v44, %v1648_v60 }
 0xa5d   : > { %v1651_v63 = vpop.xlane.xlu1 %1650 }
 0xa5e   : > { %v1654_v0 = vmul.f32 1.442695, %v1652_v61  ;;  %v1653_v1 = vsub.f32 %v1641_v51, %v1651_v63  ;;  %v2667_v63 = vld [vmem:[%s3201_s15] sm:$0xff]  }
 0xa60   : > { %2701 = vpow2.f32 %v1654_v0  ;;  %v1656_v7 = vmul.f32 1.442695, %v1653_v1  ;;  %v2668_v0 = vld [vmem:[%s3201_s15 + $0x8] sm:$0xff]  }
 0xa61   : > { %v1719_v4 = vpop.permute.xlu1 %1718 }
 0xa62   : > { %2703 = vpow2.f32 %v1656_v7  ;;  %v1724_v42 = vsel %vm992_vm5, %v1719_v4, 0 }
 0xa63   : > { %2531 = vmatpush3.bf16.msra.mxu0 %v1724_v42 }
 0xa64   : > { %2544 = vmatprep.subr.bf16.mxu0 %v2898_v11 }
 0xa65   : > { %v1771_v33 = vpop.permute.xlu1 %1770 }
 0xa66   : > { %v1788_v37 = vsel %vm872_vm4, %v1082_v36, %v1771_v33  ;;  %v2364_v33 = vld [vmem:[%s3153_s21] ss:$0 sm:$0xff] }
 0xa69   : > { %v1773_v34 = vpop.permute.xlu1 %1772 }
 0xa6a   : > { %v2702_v46 = vpop.eup %2701  ;;  %v1791_v44 = vsel %vm872_vm4, %v1083_v41, %v1773_v34 }
 0xa6b   : > { %v1658_v5 = vsel %vm872_vm4, %v2702_v46, 0.0 }
 0xa6c   : > { %v2704_v6 = vpop.eup %2703  ;;  %1659 = vadd.xlane.f32.xlu0 %v1658_v5 }
 0xa6d   : > { %v1661_v8 = vsel %vm872_vm4, %v2704_v6, 0.0  ;;  %v1779_v38 = vpop.permute.xlu1 %1778 }
 0xa6e   : > { %v1796_v45 = vsel %vm1792_vm7, %v1791_v44, %v1779_v38 }
 0xa70   : > { %1662 = vadd.xlane.f32.xlu0 %v1661_v8 }
 0xa86   : > { %1670 = vrot.lane.b32.xlu0 %v3354_v22, %s2904_s1 }
 0xa8a   : > { %1776 = vrot.lane.b32.xlu0 %v1544_v9, %s2906_s17 }
 0xaf9   : > { %v1660_v10 = vpop.xlane.xlu0 %1659 }
 0xafa   : > { %2705 = vrcp.f32 %v1660_v10 }
 0xafd   : > { %v1663_v12 = vpop.xlane.xlu0 %1662 }
 0xafe   : > { %2707 = vrcp.f32 %v1663_v12 }
 0xb01   : > { %v1671_v14 = vpop.permute.xlu0 %1670 }
 0xb02   : > { %v1676_v28 = vsel %vm992_vm5, %v1671_v14, 0 }
 0xb03   : > { %2525 = vmatpush3.bf16.msra.mxu1 %v1676_v28 }
 0xb04   : > { %v2706_v13 = vpop.eup %2705  ;;  %2536 = vmatprep.subr.bf16.mxu1 %v2898_v11 }
 0xb05   : > { %v1666_v29 = vmul.f32 %v2706_v13, %v2702_v46  ;;  %v1777_v35 = vpop.permute.xlu0 %1776 }
 0xb06   : > { %v1794_v39 = vsel %vm1792_vm7, %v1788_v37, %v1777_v35 }
 0xb07   : > { %v1668_v15 = vpack.c.bf16 %v1666_v29, %v1666_v29 }
 0xb08   : > { %v2708_v16 = vpop.eup %2707 }
 0xb09   : > { %v1667_v17 = vmul.f32 %v2708_v16, %v2704_v6  ;;  %2527 = vmatmul.mubr.msk.bf16.vlgmr.msra.gmra.mrb[28].mxu1 %vm872_vm4, %v1668_v15 }
 0xb0a   : > { %2540 = vmatprep.mubr.msk.bf16.mxu1 %vm2899_vm2, %v2898_v11  ;;  %2537 = vmatpush3.bf16.msra.mxu1 %v2664_v18 }
 0xb0b   : > { %v1669_v22 = vpack.c.bf16 %v1667_v17, %v1667_v17  ;;  %2538 = vmatprep.subr.bf16.mxu1 %v2898_v11  ;;  %v2362_v17 = vld [vmem:[%s680_s23] ss:$0 sm:$0xff] }
 0xb0d   : > { %2533 = vmatmul.mubr.msk.bf16.vlgmr.msra.gmra.mrb[32].mxu0 %vm872_vm4, %v1669_v22 }
 0xb0e   : > { %2548 = vmatprep.mubr.msk.bf16.mxu0 %vm2899_vm2, %v2898_v11  ;;  %2539 = vmatpush3.bf16.msra.mxu1 %v2665_v19 }
 0xb0f   : > { %2552 = vmatprep.subr.bf16.mxu1 %v2898_v11  ;;  %2545 = vmatpush3.bf16.msra.mxu0 %v2667_v63 }
 0xb10   : > { %2546 = vmatprep.subr.bf16.mxu0 %v2898_v11 }
 0xb13   : > { %2547 = vmatpush3.bf16.msra.mxu0 %v2668_v0 }
 0xbdc   : > { %v1712_v20 = vpop.f32.mrb[28].mxu1 }
 0xbdd   : > { %v1766_v21 = vpack.c.bf16 %v1712_v20, %v1712_v20  ;;  %v2528_v23 = vpop.f32.mrb[29].mxu1 }
 0xbde   : > { %v1715_v24 = vpop.f32.mrb[30].mxu1 }
 0xbdf   : > { %1782 = vrot.lane.b32.xlu0 %v1766_v21, %s2907_s14  ;;  %v2529_v25 = vpop.f32.mrb[31].mxu1  ;;  %v2363_v21 = vld [vmem:[%s683_s10] ss:$0 sm:$0xff] }
 0xbe0   : > { %v1760_v26 = vpop.f32.mrb[32].mxu0 }
 0xbe1   : > { %v1767_v30 = vpack.c.bf16 %v1760_v26, %v1760_v26  ;;  %v2534_v27 = vpop.f32.mrb[33].mxu0 }
 0xbe2   : > { %v1763_v31 = vpop.f32.mrb[34].mxu0  ;;  %v2670_v27 = vld [vmem:[%s3211_s19 + $0x8] sm:$0xff]  }
 0xbe3   : > { %1784 = vrot.lane.b32.xlu1 %v1767_v30, %s2907_s14  ;;  %v2535_v32 = vpop.f32.mrb[35].mxu0  ;;  %v2669_v30 = vld [vmem:[%s3211_s19] sm:$0xff]   ;;  %v2671_v31 = vld [vmem:[%s3211_s19 + $0x10] sm:$0xff]  }
 0xbe4   : > { %v2672_v32 = vld [vmem:[%s3211_s19 + $0x18] sm:$0xff]   ;;  %s3621_s19 = sld [smem:[#allocation19_spill]] }
 0xbea   : > { %p2594_p5 = scmp.eq.s32.totalorder %s3621_s19, 1 }
 0xc51   : > { %v1783_v40 = vpop.permute.xlu0 %1782 }
 0xc52   : > { %v1799_v43 = vsel %vm1797_vm6, %v1794_v39, %v1783_v40 }
 0xc53   : > { %1804 = vst.msk [vmem:[#allocation3] sm:$0xf] %vm837_vm3, %v1799_v43 }
 0xc55   : > { %v1785_v47 = vpop.permute.xlu1 %1784 }
 0xc56   : > { %v1802_v49 = vsel %vm1797_vm6, %v1796_v45, %v1785_v47 }
 0xc57   : > { %1805 = vst.msk [vmem:[#allocation3 + $0x4] sm:$0xf] %vm837_vm3, %v1802_v49 }
 0xc5e   : > { %v2666_v48 = vld [vmem:[#allocation3] sm:$0xff]  }
 0xc5f   : > { %2541 = vmatmul.mubr.msk.bf16.vlgmr.msra.gmra.mrb[32].mxu1 %vm712_vm1, %v2666_v48 }
 0xc60   : > { %2560 = vmatprep.mubr.msk.bf16.mxu1 %vm2899_vm2, %v2898_v11  ;;  %2553 = vmatpush3.bf16.msra.mxu1 %v2669_v30 }
 0xc61   : > { %2554 = vmatprep.subr.bf16.mxu1 %v2898_v11 }
 0xc64   : > { %2555 = vmatpush3.bf16.msra.mxu1 %v2670_v27 }
 0xc65   : > { %2556 = vmatprep.subr.bf16.mxu1 %v2898_v11 }
 0xc68   : > { %2557 = vmatpush3.bf16.msra.mxu1 %v2671_v31 }
 0xc69   : > { %2558 = vmatprep.subr.bf16.mxu1 %v2898_v11 }
 0xc6c   : > { %2559 = vmatpush3.bf16.msra.mxu1 %v2672_v32 }
 0xd32   : > { %v1873_v51 = vpop.f32.mrb[32].mxu1 }
 0xd33   : > { %v1874_v52 = vadd.f32 %v2357_v50, %v1873_v51  ;;  %v2542_v53 = vpop.f32.mrb[33].mxu1 }
 0xd34   : > { %v1876_v54 = vpop.f32.mrb[34].mxu1 }
 0xd35   : > { %v3467_v55 = vadd.f32 %v1874_v52, %v3214_v2  ;;  %v1877_v56 = vadd.f32 %v2357_v50, %v1876_v54  ;;  %v2543_v57 = vpop.f32.mrb[35].mxu1 }
 0xd37   : > { %v3470_v58 = vadd.f32 %v1877_v56, %v3216_v3  ;;  %v1884_v62 = vsel %vm712_vm1, %v3467_v55, 0.0  ;;  %v1890_v59 = vmul.f32 %v3467_v55, %v3467_v55 }
 0xd38   : > { %1885 = vadd.xlane.f32.xlu0 %v1884_v62 }
 0xd39   : > { %v1887_v60 = vsel %vm712_vm1, %v3470_v58, 0.0  ;;  %v1892_v2 = vsel %vm712_vm1, %v1890_v59, 0.0  ;;  %v1891_v61 = vmul.f32 %v3470_v58, %v3470_v58 }
 0xd3a   : > { %1888 = vadd.xlane.f32.xlu1 %v1887_v60 }
 0xd3b   : > { %v1895_v3 = vsel %vm712_vm1, %v1891_v61, 0.0 }
 0xd3c   : > { %1893 = vadd.xlane.f32.xlu0 %v1892_v2  ;;  %v2368_v2 = vld [vmem:[%s696_s18] ss:$0 sm:$0xff]  ;;  %s2803_s18 = scalar_lea.vmem %s2115_s27, 256 }
 0xd3d   : > { %p2804_p10 = scmp.ne.s32.totalorder %s2115_s27, %s2803_s18  ;;  %p2811_p3 = scmp.lt.s32.totalorder %s2803_s18, %s2803_s18 }
 0xd3f   : > { %p2805_p11 = pnand %p2804_p10, %p2594_p5  ;;  %p2812_p0 = por %p2811_p3, %p2810_p2 }
 0xd40   : > { %1896 = vadd.xlane.f32.xlu0 %v1895_v3 }
 0xd41   : > { %p2806_p13 = pneg %p2805_p11 }
 0xd43   : > { %p2813_p12 = pnand %p2812_p0, %p2806_p13 }
 0xdc5   : > { %v1886_v1 = vpop.xlane.xlu0 %1885 }
 0xdc6   : > { %v1898_v7 = vmul.f32 0.03125, %v1886_v1 }
 0xdc7   : > { %v1889_v4 = vpop.xlane.xlu1 %1888 }
 0xdc8   : > { %v1902_v46 = vmul.f32 %v1898_v7, %v1898_v7  ;;  %v1899_v5 = vmul.f32 0.03125, %v1889_v4  ;;  %v1906_v29 = vsub.f32 %v3467_v55, %v1898_v7 }
 0xdc9   : > { %v1894_v42 = vpop.xlane.xlu0 %1893 }
 0xdca   : > { %v1900_v6 = vmul.f32 0.03125, %v1894_v42  ;;  %v1903_v10 = vmul.f32 %v1899_v5, %v1899_v5  ;;  %v1907_v22 = vsub.f32 %v3470_v58, %v1899_v5 }
 0xdcc   : > { %v1904_v8 = vsub.f32 %v1900_v6, %v1902_v46 }
 0xdcd   : > { %v1897_v9 = vpop.xlane.xlu0 %1896 }
 0xdce   : > { %v1908_v12 = vadd.f32 1e-06, %v1904_v8  ;;  %v1901_v14 = vmul.f32 0.03125, %v1897_v9 }
 0xdd0   : > { %2709 = vrsqrt.f32 %v1908_v12  ;;  %v1905_v28 = vsub.f32 %v1901_v14, %v1903_v10 }
 0xdd2   : > { %v1909_v13 = vadd.f32 1e-06, %v1905_v28 }
 0xdd4   : > { %2711 = vrsqrt.f32 %v1909_v13 }
 0xdda   : > { %v2710_v15 = vpop.eup %2709 }
 0xddb   : > { %v1912_v16 = vmul.f32 %v2710_v15, %v1906_v29 }
 0xddd   : > { %v1920_v20 = vmul.f32 %v2362_v17, %v1912_v16 }
 0xdde   : > { %v2712_v18 = vpop.eup %2711 }
 0xddf   : > { %v1913_v19 = vmul.f32 %v2712_v18, %v1907_v22  ;;  %v1928_v24 = vadd.f32 %v2363_v21, %v1920_v20 }
 0xde1   : > { %v1921_v23 = vmul.f32 %v2362_v17, %v1913_v19 }
 0xde3   : > { %v1929_v25 = vadd.f32 %v2363_v21, %v1921_v23 }
 0xde5   : > { %v1930_v26 = vpack.c.bf16 %v1929_v25, %v1928_v24 }
 0xde7   : > { %2549 = vmatmul.mubr.msk.bf16.vlgmr.msra.gmra.mrb[36].mxu0 %vm712_vm1, %v1930_v26 }
 0xeba   : > { %v1991_v34 = vpop.f32.mrb[36].mxu0 }
 0xebb   : > { %v1992_v35 = vadd.f32 %v2364_v33, %v1991_v34  ;;  %v2550_v36 = vpop.f32.mrb[37].mxu0 }
 0xebc   : > { %v1994_v37 = vpop.f32.mrb[38].mxu0 }
 0xebd   : > { %v2000_v38 = vmul.f32 0.044715, %v1992_v35  ;;  %v1995_v39 = vadd.f32 %v2364_v33, %v1994_v37  ;;  %v2551_v40 = vpop.f32.mrb[39].mxu0  ;;  %v1998_v54 = vmul.f32 0.5, %v1992_v35 }
 0xebf   : > { %v2002_v41 = vmul.f32 %v2000_v38, %v1992_v35  ;;  %v2001_v43 = vmul.f32 0.044715, %v1995_v39  ;;  %v1999_v56 = vmul.f32 0.5, %v1995_v39 }
 0xec1   : > { %v2004_v44 = vmul.f32 %v2002_v41, %v1992_v35  ;;  %v2003_v45 = vmul.f32 %v2001_v43, %v1995_v39 }
 0xec3   : > { %v2006_v47 = vadd.f32 %v2004_v44, %v1992_v35  ;;  %v2005_v49 = vmul.f32 %v2003_v45, %v1995_v39 }
 0xec5   : > { %v2008_v48 = vmul.f32 0.7978846, %v2006_v47  ;;  %v2007_v50 = vadd.f32 %v2005_v49, %v1995_v39 }
 0xec7   : > { %2713 = vtanh.f32 %v2008_v48  ;;  %v2009_v11 = vmul.f32 0.7978846, %v2007_v50 }
 0xec9   : > { %2715 = vtanh.f32 %v2009_v11 }
 0xed1   : > { %v2714_v51 = vpop.eup %2713 }
 0xed2   : > { %v2012_v52 = vadd.f32 1.0, %v2714_v51 }
 0xed3   : > { %v2716_v53 = vpop.eup %2715 }
 0xed4   : > { %v2013_v57 = vadd.f32 1.0, %v2716_v53  ;;  %v2014_v62 = vmul.f32 %v2012_v52, %v1998_v54 }
 0xed6   : > { %v2015_v59 = vmul.f32 %v2013_v57, %v1999_v56 }
 0xed8   : > { %v2016_v60 = vpack.c.bf16 %v2015_v59, %v2014_v62 }
 0xeda   : > { %2561 = vmatmul.mubr.msk.bf16.vlgmr.msra.gmra.mrb[36].mxu1 %vm2056_vm8, %v2016_v60 }
 0xfad   : > { %v2094_v61 = vpop.f32.mrb[36].mxu1 }
 0xfae   : > { %v2095_v3 = vadd.f32 %v2368_v2, %v2094_v61  ;;  %v2562_v63 = vpop.f32.mrb[37].mxu1 }
 0xfaf   : > { %v2097_v0 = vpop.f32.mrb[38].mxu1 }
 0xfb0   : > { %v2101_v1 = vadd.f32 %v2095_v3, %v3467_v55  ;;  %v2098_v7 = vadd.f32 %v2368_v2, %v2097_v0  ;;  %v2563_v4 = vpop.f32.mrb[39].mxu1 }
 0xfb2   : > { %2103 = vst.msk [vmem:[#allocation10] sm:$0xff] %vm712_vm1, %v2101_v1  ;;  %v2102_v42 = vadd.f32 %v2098_v7, %v3470_v58 }
 0xfb4   : > { %2104 = vst.msk [vmem:[#allocation10 + $0x8] sm:$0xff] %vm712_vm1, %v2102_v42 }
 0xfb5   : > { %2816 = shalt.err (!%p2813_p12)
}
 0xfb6   : > { %s3623_s22 = sld [smem:[#allocation30_spill]] }
 0xfbc   : > { %s2817_s25 = scalar_lea.hbm %s3623_s22, 256 }
 0xfbd   : > { %p2818_p6 = scmp.ne.s32.totalorder %s3623_s22, %s2817_s25  ;;  %p2823_p7 = scmp.lt.u32.totalorder %s2817_s25, %s3623_s22 }
 0xfbf   : > { %p2819_p9 = pnand %p2818_p6, %p2594_p5 }
 0xfc1   : > { %p2820_p8 = pneg %p2819_p9 }
 0xfc3   : > { %p2825_p1 = pnand %p2823_p7, %p2820_p8 }
 0xfc5   : > { %2828 = shalt.err (!%p2825_p1)
}
 0xfc6   : > { %s2909_s17 = smov 128  }
 0xfc7   : > { %2575 = dma.vmem_to_hbm [thread:$0]  (%p2594_p5), %s2115_s27, 256, %s3623_s22, [#allocation6], %s2909_s17, %s2909_s17, %s2905_s11  }
 0xfc8   : > { %2866 = dma.done.wait (%p2594_p5), [#allocation6], 256  }
 0xfc9   : > { %2868 = vsyncadd (%p2594_p5), [#allocation6], 4294967040 }
 0xfca PF: > { %s3624_s4 = sld [smem:[#allocation18_spill]]  ;;  %s3625_s29 = sld [smem:[#allocation15_spill]] }
 0xfcb   : > { %s3626_s30 = sld [smem:[#allocation16_spill]]  ;;  %s3627_s15 = sld [smem:[#allocation21_spill]] }
 0xfcc   : > { %s3628_s16 = sld [smem:[#allocation17_spill]]  ;;  %s3629_s17 = sld [smem:[#allocation20_spill]] }
 0xfd0   : > { %s27_s18 = sadd.s32 1, %s3624_s4  }
 0xfd1   : > { %p24_p4 = scmp.ge.s32.totalorder %s27_s18, 4  }
 0xfd3   :  { %26 = sbr.rel (!%p24_p4) target bundleno = 15 (0xf), region = 161 }
 0xfda   :  { %2130 = vsyncpa [#allocation5], 1 }
 0xfdb   :  { %2132 = vsyncpa [#allocation5 + $0x1], 1 }
 0xfdc   :  { %2133 = vsyncpa [#allocation8], 1 }
 0xfdd   :  { %2134 = vsyncpa [#allocation6], 1 }
 0xfde   :  { %2136 = vsyncpa [#allocation6 + $0x1], 1 }

</bundles_post_ra>
